<compile_context>
chip_gen: v5e
topology: v5e:2x2
jax: 0.10.0
libtpu: 0.0.40
codegen_flags: <defaults>
</compile_context>

<pallas_src>
import math

import jax
import jax.numpy as jnp
from jax.experimental import pallas as pl
from jax.experimental.pallas import tpu as pltpu


def _round_up(x, m):
    return (x + m - 1) // m * m


def _pick_chunk(T, max_chunk=8):
    """Largest divisor of T that is <= max_chunk (falls back to 1)."""
    tc = max(1, min(T, max_chunk))
    while T % tc:
        tc -= 1
    return tc


# ----------------------------------------------------------------------------
# Kernel 1: all RNN layers + full time loop fused into one scan kernel.
# ----------------------------------------------------------------------------
def _rnn_stack_kernel(xp_ref, th_ref, h0_ref, whh_ref, wih_ref, brest_ref,
                      y_ref, hfin_ref, h_scr):
    """Grid = (T // Tc,).  One grid step == Tc time steps over ALL layers.

    xp_ref    : (Tc, B, H)     f32  hoisted layer-0 projection x@W_ih0 + b0
    th_ref    : (Tc, B, 1)     f32  duration threshold (keep old h if l > th)
    h0_ref    : (L, B, H)      f32  initial hidden states (resident)
    whh_ref   : (L, H, H)      bf16 recurrent weights, all layers (resident)
    wih_ref   : (L-1, H, H)    bf16 input weights for layers >= 1 (resident)
    brest_ref : (L-1, 1, H)    f32  summed biases for layers >= 1 (resident)
    y_ref     : (Tc, B, L*H)   bf16 per-step outputs, already layer-stacked
    hfin_ref  : (L, B, H)      f32  final hidden states (resident output)
    h_scr     : (L, B, H)      f32  VMEM scratch carrying h across chunks
    """
    L, _, H = h_scr.shape
    Tc = xp_ref.shape[0]

    @pl.when(pl.program_id(0) == 0)
    def _():
        h_scr[...] = h0_ref[...]

    # Tc and L are small compile-time constants -> fully static (unrolled)
    # loops; every load/store below uses static, lane-aligned indices.
    for i in range(Tc):
        th_i = th_ref[i]                                    # (B, 1) f32
        inp = None
        for l in range(L):
            h_old = h_scr[l]                                # (B, H) f32
            if l == 0:
                pre = xp_ref[i]                             # bias already folded
            else:
                pre = (jnp.dot(inp.astype(jnp.bfloat16), wih_ref[l - 1],
                               preferred_element_type=jnp.float32)
                       + brest_ref[l - 1])
            pre = pre + jnp.dot(h_old.astype(jnp.bfloat16), whh_ref[l],
                                preferred_element_type=jnp.float32)
            h_new = jnp.tanh(pre)
            # duration gate: layer keeps its previous hidden state when l > thresh
            h = jnp.where(th_i < float(l), h_old, h_new)
            h_scr[l] = h
            y_ref[i, :, l * H:(l + 1) * H] = h.astype(y_ref.dtype)
            inp = h

    hfin_ref[...] = h_scr[...]


def rnn_stack_scan(xproj0, thresh, h0, w_hh, w_ih_rest, b_rest, *, max_chunk=8):
    """Run all duration-masked RNN layers over the full sequence.

    xproj0    : (T, B, H)    f32   hoisted layer-0 projection (bias folded)
    thresh    : (T, B, 1)    f32   floor(duration / rescale_rate)
    h0        : (L, B, H)    f32
    w_hh      : (L, H, H)    bf16
    w_ih_rest : (L-1, H, H)  bf16
    b_rest    : (L-1, 1, H)  f32
    returns   : y (T, B, L*H) bf16, h_final (L, B, H) f32
    """
    T, B, H = xproj0.shape
    L = h0.shape[0]
    Tc = _pick_chunk(T, max_chunk)

    # TODO(synk): on v7x (2 TensorCores) add a leading "parallel" batch-tile
    #             grid axis (grid=(B//Bt, T//Tc)) to use the second core.
    return pl.pallas_call(
        _rnn_stack_kernel,
        out_shape=(jax.ShapeDtypeStruct((T, B, L * H), jnp.bfloat16),
                   jax.ShapeDtypeStruct((L, B, H), jnp.float32)),
        grid=(T // Tc,),
        in_specs=[
            pl.BlockSpec((Tc, B, H), lambda t: (t, 0, 0)),       # xproj chunk
            pl.BlockSpec((Tc, B, 1), lambda t: (t, 0, 0)),       # thresh chunk
            pl.BlockSpec((L, B, H), lambda t: (0, 0, 0)),        # h0 (resident)
            pl.BlockSpec((L, H, H), lambda t: (0, 0, 0)),        # W_hh (resident)
            pl.BlockSpec((L - 1, H, H), lambda t: (0, 0, 0)),    # W_ih l>0
            pl.BlockSpec((L - 1, 1, H), lambda t: (0, 0, 0)),    # bias l>0
        ],
        out_specs=(
            pl.BlockSpec((Tc, B, L * H), lambda t: (t, 0, 0)),   # stacked y
            pl.BlockSpec((L, B, H), lambda t: (0, 0, 0)),        # final hidden
        ),
        scratch_shapes=[pltpu.VMEM((L, B, H), jnp.float32)],
        compiler_params=pltpu.CompilerParams(
            dimension_semantics=("arbitrary",),    # sequential recurrence
            vmem_limit_bytes=48 * 1024 * 1024),    # explicit headroom (v7x: 64 MiB phys)
    )(xproj0, thresh, h0, w_hh, w_ih_rest, b_rest)


# ----------------------------------------------------------------------------
# Kernel 2: fused fc head  Linear(L*H -> E) -> Tanh -> Linear(E -> V),
# vocab-tiled so w2 never has to be fully VMEM-resident.
# ----------------------------------------------------------------------------
def _fc_head_kernel(x_ref, w1_ref, b1_ref, w2_ref, b2_ref, o_ref, h_scr):
    @pl.when(pl.program_id(1) == 0)                    # once per row tile
    def _():
        h_scr[...] = jnp.tanh(
            jnp.dot(x_ref[...], w1_ref[...],
                    preferred_element_type=jnp.float32) + b1_ref[...])
    o_ref[...] = (jnp.dot(h_scr[...].astype(jnp.bfloat16), w2_ref[...],
                          preferred_element_type=jnp.float32) + b2_ref[...])


def fc_head(x, w1, b1, w2, b2, *, tm_max=256, tv_max=512):
    """x: (M, K1) bf16; w1: (K1, E) bf16; w2: (E, V) bf16; returns (M, V) f32."""
    M, K1 = x.shape
    E = w1.shape[1]
    V = w2.shape[1]

    # Row tiling: pad rows instead of asserting divisibility.
    tm = min(tm_max, _round_up(M, 8))
    M_pad = _round_up(M, tm)
    if M_pad != M:
        x = jnp.pad(x, ((0, M_pad - M), (0, 0)))

    # Vocab tiling keeps w2's VMEM footprint bounded for large vocabularies.
    tv = V
    for cand in (tv_max, 256, 128):
        if cand <= V and V % cand == 0:
            tv = cand
            break

    out = pl.pallas_call(
        _fc_head_kernel,
        out_shape=jax.ShapeDtypeStruct((M_pad, V), jnp.float32),
        grid=(M_pad // tm, V // tv),
        in_specs=[
            pl.BlockSpec((tm, K1), lambda i, j: (i, 0)),
            pl.BlockSpec((K1, E), lambda i, j: (0, 0)),
            pl.BlockSpec((1, E), lambda i, j: (0, 0)),
            pl.BlockSpec((E, tv), lambda i, j: (0, j)),
            pl.BlockSpec((1, tv), lambda i, j: (0, j)),
        ],
        out_specs=pl.BlockSpec((tm, tv), lambda i, j: (i, j)),
        scratch_shapes=[pltpu.VMEM((tm, E), jnp.float32)],
        compiler_params=pltpu.CompilerParams(
            dimension_semantics=("parallel", "arbitrary"),
            vmem_limit_bytes=48 * 1024 * 1024),
    )(x, w1, b1, w2, b2)
    return out[:M] if M_pad != M else out


# ----------------------------------------------------------------------------
# durationLMLayer.forward (rnn='rnn', adapt=False, inference)
# ----------------------------------------------------------------------------
def duration_lm_forward(src, durations, hidden, params, *, num_layers):
    """src: (B,T) int32 token ids; durations: (B,T) int32 (= fix_src when
    adapt=False); hidden: list of (B,H) f32 per layer.
    Returns (prediction (B,T,V) f32, new_hidden list of (B,H) f32)."""
    # TODO(synk): adapt=True path (FPmodel fix_predict + soft sigmoid mask) not
    #             implemented — simpleLSTM is not defined in the spec.
    # TODO(synk): dropout_emb / dropout_layer are identity (rate 0 / eval).
    rescale_rate = 12 // num_layers
    B, T = src.shape
    H = params["w_hh"].shape[-1]

    # Embedding lookup + HOISTED layer-0 input projection: one big batched
    # bf16 matmul on the MXU instead of T serial per-step ones.
    emb = jnp.take(params["embedding"], src, axis=0)           # (B, T, E)
    x = jnp.transpose(emb, (1, 0, 2)).astype(jnp.bfloat16)     # (T, B, E)
    xproj0 = jnp.einsum("tbe,eh->tbh", x, params["w_ih0"],
                        preferred_element_type=jnp.float32) + params["b0"]

    # Duration threshold precomputed host-side (no in-kernel integer divide):
    # layer l keeps its old hidden state iff l > floor(duration/rescale_rate).
    thresh = (durations // rescale_rate).astype(jnp.float32)   # (B, T)
    thresh = jnp.transpose(thresh)[:, :, None]                 # (T, B, 1)

    h0 = jnp.stack(hidden, axis=0)                             # (L, B, H)

    y, h_fin = rnn_stack_scan(xproj0, thresh, h0, params["w_hh"],
                              params["w_ih_rest"], params["b_rest"])
    # y: (T, B, L*H) bf16, already in [layer0 | layer1 | ...] feature order,
    # so no (L,T,B,H) stack/transpose is needed before the head.

    w1, b1, w2, b2 = params["fc"]
    pred = fc_head(y.reshape(T * B, num_layers * H), w1, b1, w2, b2)
    # TODO(synk): for very large V the (T,B,V)->(B,T,V) transpose below could
    #             be folded into the head's output BlockSpec instead.
    pred = jnp.transpose(pred.reshape(T, B, -1), (1, 0, 2))    # (B, T, V)

    new_hidden = [h_fin[l] for l in range(num_layers)]
    return pred, new_hidden


# ----------------------------------------------------------------------------
# Parameter init (mirrors nn.RNNCell / nn.Linear uniform init, weights -> bf16)
# ----------------------------------------------------------------------------
def init_params(key, vocab_size, embedding_dim, hidden_dim, num_layers):
    assert num_layers > 1
    keys = jax.random.split(key, num_layers + 2)
    # TODO(synk): pretrained GloVe embedding loading (read_embedding) omitted.
    emb = jax.random.normal(keys[0], (vocab_size, embedding_dim), jnp.float32)

    w_hh_list, w_ih_rest, b_rest = [], [], []
    w_ih0 = b0 = None
    for l in range(num_layers):
        d_in = embedding_dim if l == 0 else hidden_dim
        k = 1.0 / math.sqrt(hidden_dim)
        kw1, kw2, kb1, kb2 = jax.random.split(keys[1 + l], 4)
        w_ih = jax.random.uniform(kw1, (d_in, hidden_dim), jnp.float32, -k, k)
        w_hh = jax.random.uniform(kw2, (hidden_dim, hidden_dim), jnp.float32, -k, k)
        b_ih = jax.random.uniform(kb1, (hidden_dim,), jnp.float32, -k, k)
        b_hh = jax.random.uniform(kb2, (hidden_dim,), jnp.float32, -k, k)
        bias = (b_ih + b_hh).reshape(1, hidden_dim)
        w_hh_list.append(w_hh.astype(jnp.bfloat16))
        if l == 0:
            w_ih0 = w_ih.astype(jnp.bfloat16)
            b0 = bias
        else:
            w_ih_rest.append(w_ih.astype(jnp.bfloat16))
            b_rest.append(bias)

    in1 = hidden_dim * num_layers
    k1 = 1.0 / math.sqrt(in1)
    k2 = 1.0 / math.sqrt(embedding_dim)
    ka, kb, kc, kd = jax.random.split(keys[-1], 4)
    w1 = jax.random.uniform(ka, (in1, embedding_dim), jnp.float32, -k1, k1
                            ).astype(jnp.bfloat16)
    b1 = jax.random.uniform(kb, (1, embedding_dim), jnp.float32, -k1, k1)
    w2 = jax.random.uniform(kc, (embedding_dim, vocab_size), jnp.float32, -k2, k2
                            ).astype(jnp.bfloat16)
    b2 = jax.random.uniform(kd, (1, vocab_size), jnp.float32, -k2, k2)

    return {
        "embedding": emb,
        "w_ih0": w_ih0, "b0": b0,
        "w_hh": jnp.stack(w_hh_list, axis=0),
        "w_ih_rest": jnp.stack(w_ih_rest, axis=0),
        "b_rest": jnp.stack(b_rest, axis=0),
        "fc": (w1, b1, w2, b2),
    }


# ----------------------------------------------------------------------------
# Pure-JAX reference (mirrors the PyTorch forward, same bf16 rounding points)
# ----------------------------------------------------------------------------
def _reference_forward(src, durations, hidden, params, *, num_layers):
    rescale_rate = 12 // num_layers
    B, T = src.shape
    emb = jnp.take(params["embedding"], src, axis=0)
    x = jnp.transpose(emb, (1, 0, 2)).astype(jnp.bfloat16).astype(jnp.float32)
    thresh = durations // rescale_rate                        # (B, T) int

    w_ih0 = params["w_ih0"].astype(jnp.float32)
    b0 = params["b0"]
    w_hh = params["w_hh"].astype(jnp.float32)
    w_ih_rest = params["w_ih_rest"].astype(jnp.float32)
    b_rest = params["b_rest"]

    hs = list(hidden)
    ys = []
    for t in range(T):
        inp = x[t]
        feats = []
        for l in range(num_layers):
            h_old = hs[l]
            if l == 0:
                pre = inp @ w_ih0 + b0
            else:
                pre = (inp.astype(jnp.bfloat16).astype(jnp.float32)
                       @ w_ih_rest[l - 1] + b_rest[l - 1])
            pre = pre + (h_old.astype(jnp.bfloat16).astype(jnp.float32)
                         @ w_hh[l])
            h_new = jnp.tanh(pre)
            keep = (l > thresh[:, t])[:, None]
            h = jnp.where(keep, h_old, h_new)       # torch: h*(1-m)+h_old*m
            hs[l] = h
            feats.append(h)
            inp = h
        ys.append(jnp.concatenate(feats, axis=-1))
    out = jnp.stack(ys, axis=0)                               # (T, B, L*H)
    out_bf = out.astype(jnp.bfloat16).astype(jnp.float32)

    w1, b1, w2, b2 = params["fc"]
    h1 = jnp.tanh(out_bf.reshape(T * B, -1) @ w1.astype(jnp.float32) + b1)
    pred = (h1.astype(jnp.bfloat16).astype(jnp.float32)
            @ w2.astype(jnp.float32) + b2)
    pred = jnp.transpose(pred.reshape(T, B, -1), (1, 0, 2))   # (B, T, V)
    return pred, hs


if __name__ == "__main__":
    # Small, TPU-friendly shapes: B multiple of 8, H / E multiples of 128.
    vocab_size = 384        # -> 3 vocab tiles of 128 in the fc head
    embedding_dim = 128
    hidden_dim = 128
    num_layers = 2          # module asserts num_layers > 1; rescale_rate = 6
    batch = 8
    seq_len = 16            # -> 2 time chunks of Tc = 8 in the RNN scan

    key = jax.random.PRNGKey(0)
    kp, ks, kd, kh = jax.random.split(key, 4)

    params = init_params(kp, vocab_size, embedding_dim, hidden_dim, num_layers)
    src = jax.random.randint(ks, (batch, seq_len), 0, vocab_size, jnp.int32)
    durations = jax.random.randint(kd, (batch, seq_len), 0, 12, jnp.int32)
    hidden = [jax.random.normal(jax.random.fold_in(kh, l),
                                (batch, hidden_dim), jnp.float32)
              for l in range(num_layers)]

    pred, new_hidden = duration_lm_forward(
        src, durations, hidden, params, num_layers=num_layers)
    pred = jax.block_until_ready(pred)

    ref_pred, ref_hidden = _reference_forward(
        src, durations, hidden, params, num_layers=num_layers)

    assert pred.shape == (batch, seq_len, vocab_size)
    assert len(new_hidden) == num_layers
    assert new_hidden[0].shape == (batch, hidden_dim)

    max_err = float(jnp.max(jnp.abs(pred - ref_pred)))
    assert jnp.allclose(pred, ref_pred, atol=2e-2, rtol=2e-2), \
        f"prediction mismatch vs reference: max abs err = {max_err}"
    for l in range(num_layers):
        h_err = float(jnp.max(jnp.abs(new_hidden[l] - ref_hidden[l])))
        assert h_err < 1e-2, f"hidden[{l}] mismatch: max abs err = {h_err}"

    print("KERNEL_OK")
</pallas_src>

<mosaic_0001>
module attributes {stable_mosaic.version = 11 : i64} {
  func.func @_rnn_stack_kernel(%arg0: i32, %arg1: memref<8x8x128xf32, #tpu.memory_space<vmem>>, %arg2: memref<8x8x1xf32, #tpu.memory_space<vmem>>, %arg3: memref<2x8x128xf32, #tpu.memory_space<vmem>>, %arg4: memref<2x128x128xbf16, #tpu.memory_space<vmem>>, %arg5: memref<1x128x128xbf16, #tpu.memory_space<vmem>>, %arg6: memref<1x1x128xf32, #tpu.memory_space<vmem>>, %arg7: memref<8x8x256xbf16, #tpu.memory_space<vmem>>, %arg8: memref<2x8x128xf32, #tpu.memory_space<vmem>>, %arg9: memref<2x8x128xf32, #tpu.memory_space<vmem>>) attributes {dimension_semantics = [#tpu.dimension_semantics<arbitrary>], iteration_bounds = array<i64: 2>, scalar_prefetch = 0 : i64, scratch_operands = 1 : i64, tpu.core_type = #tpu.core_type<tc>, window_params = [{transform_indices = @transform_0, window_bounds = array<i64: 8, 8, 128>}, {transform_indices = @transform_1, window_bounds = array<i64: 8, 8, 1>}, {pipeline_mode = #tpu.pipeline_mode<synchronous>, transform_indices = @transform_2, window_bounds = array<i64: 2, 8, 128>}, {pipeline_mode = #tpu.pipeline_mode<synchronous>, transform_indices = @transform_3, window_bounds = array<i64: 2, 128, 128>}, {pipeline_mode = #tpu.pipeline_mode<synchronous>, transform_indices = @transform_4, window_bounds = array<i64: 1, 128, 128>}, {pipeline_mode = #tpu.pipeline_mode<synchronous>, transform_indices = @transform_5, window_bounds = array<i64: 1, 1, 128>}, {transform_indices = @transform_6, window_bounds = array<i64: 8, 8, 256>}, {pipeline_mode = #tpu.pipeline_mode<synchronous>, transform_indices = @transform_7, window_bounds = array<i64: 2, 8, 128>}]} {
    %c0_i32 = arith.constant 0 : i32
    %0 = arith.cmpi eq, %arg0, %c0_i32 : i32
    %1 = arith.extui %0 : i1 to i32
    %c0_i32_0 = arith.constant 0 : i32
    %2 = arith.cmpi ne, %1, %c0_i32_0 : i32
    scf.if %2 {
      %c0_325 = arith.constant 0 : index
      %c0_326 = arith.constant 0 : index
      %c0_327 = arith.constant 0 : index
      %421 = vector.load %arg3[%c0_325, %c0_326, %c0_327] : memref<2x8x128xf32, #tpu.memory_space<vmem>>, vector<2x8x128xf32>
      %c0_328 = arith.constant 0 : index
      %c0_329 = arith.constant 0 : index
      %c0_330 = arith.constant 0 : index
      %422 = vector.load %arg9[%c0_328, %c0_329, %c0_330] : memref<2x8x128xf32, #tpu.memory_space<vmem>>, vector<2x8x128xf32>
      tpu.vector_store %arg9[%c0_328, %c0_329, %c0_330], %421 {strides = array<i32>} : memref<2x8x128xf32, #tpu.memory_space<vmem>>, vector<2x8x128xf32>,
    } else {
    }
    %c0 = arith.constant 0 : index
    %c0_1 = arith.constant 0 : index
    %c0_2 = arith.constant 0 : index
    %3 = vector.load %arg2[%c0, %c0_1, %c0_2] : memref<8x8x1xf32, #tpu.memory_space<vmem>>, vector<1x8x1xf32>
    %4 = vector.shape_cast %3 : vector<1x8x1xf32> to vector<8x1xf32>
    %c0_3 = arith.constant 0 : index
    %c0_4 = arith.constant 0 : index
    %c0_5 = arith.constant 0 : index
    %5 = vector.load %arg9[%c0_3, %c0_4, %c0_5] : memref<2x8x128xf32, #tpu.memory_space<vmem>>, vector<1x8x128xf32>
    %6 = vector.shape_cast %5 : vector<1x8x128xf32> to vector<8x128xf32>
    %c0_6 = arith.constant 0 : index
    %c0_7 = arith.constant 0 : index
    %c0_8 = arith.constant 0 : index
    %7 = vector.load %arg1[%c0_6, %c0_7, %c0_8] : memref<8x8x128xf32, #tpu.memory_space<vmem>>, vector<1x8x128xf32>
    %8 = vector.shape_cast %7 : vector<1x8x128xf32> to vector<8x128xf32>
    %9 = arith.truncf %6 : vector<8x128xf32> to vector<8x128xbf16>
    %c0_9 = arith.constant 0 : index
    %c0_10 = arith.constant 0 : index
    %c0_11 = arith.constant 0 : index
    %10 = vector.load %arg4[%c0_9, %c0_10, %c0_11] : memref<2x128x128xbf16, #tpu.memory_space<vmem>>, vector<1x128x128xbf16>
    %11 = vector.shape_cast %10 : vector<1x128x128xbf16> to vector<128x128xbf16>
    %cst = arith.constant dense<0.000000e+00> : vector<8x128xf32>
    %12 = tpu.matmul %9, %11, %cst {dimension_numbers = #tpu.dot_dimension_numbers<[1], [0], [0], [1], [0, 0, 1, 1], [], []>} : vector<8x128xbf16>, vector<128x128xbf16>, vector<8x128xf32> -> vector<8x128xf32>
    %13 = arith.addf %8, %12 : vector<8x128xf32>
    %14 = math.tanh %13 : vector<8x128xf32>
    %cst_12 = arith.constant 0.000000e+00 : f32
    %15 = vector.broadcast %cst_12 : f32 to vector<8x1xf32>
    %16 = arith.cmpf olt, %4, %15 : vector<8x1xf32>
    %17 = vector.shape_cast %16 : vector<8x1xi1> to vector<8x1xi1>
    %18 = vector.broadcast %17 : vector<8x1xi1> to vector<8x128xi1>
    %19 = arith.select %18, %6, %14 : vector<8x128xi1>, vector<8x128xf32>
    %c0_13 = arith.constant 0 : index
    %c0_14 = arith.constant 0 : index
    %c0_15 = arith.constant 0 : index
    %20 = vector.load %arg9[%c0_13, %c0_14, %c0_15] : memref<2x8x128xf32, #tpu.memory_space<vmem>>, vector<1x8x128xf32>
    %21 = vector.shape_cast %20 : vector<1x8x128xf32> to vector<8x128xf32>
    %22 = vector.shape_cast %19 : vector<8x128xf32> to vector<1x8x128xf32>
    tpu.vector_store %arg9[%c0_13, %c0_14, %c0_15], %22 {strides = array<i32>} : memref<2x8x128xf32, #tpu.memory_space<vmem>>, vector<1x8x128xf32>,
    %23 = arith.truncf %19 : vector<8x128xf32> to vector<8x128xbf16>
    %c0_16 = arith.constant 0 : index
    %c0_17 = arith.constant 0 : index
    %c0_18 = arith.constant 0 : index
    %24 = vector.load %arg7[%c0_16, %c0_17, %c0_18] : memref<8x8x256xbf16, #tpu.memory_space<vmem>>, vector<1x8x128xbf16>
    %25 = vector.shape_cast %24 : vector<1x8x128xbf16> to vector<8x128xbf16>
    %26 = vector.shape_cast %23 : vector<8x128xbf16> to vector<1x8x128xbf16>
    tpu.vector_store %arg7[%c0_16, %c0_17, %c0_18], %26 {strides = array<i32>} : memref<8x8x256xbf16, #tpu.memory_space<vmem>>, vector<1x8x128xbf16>,
    %c1 = arith.constant 1 : index
    %c0_19 = arith.constant 0 : index
    %c0_20 = arith.constant 0 : index
    %27 = vector.load %arg9[%c1, %c0_19, %c0_20] : memref<2x8x128xf32, #tpu.memory_space<vmem>>, vector<1x8x128xf32>
    %28 = vector.shape_cast %27 : vector<1x8x128xf32> to vector<8x128xf32>
    %29 = arith.truncf %19 : vector<8x128xf32> to vector<8x128xbf16>
    %c0_21 = arith.constant 0 : index
    %c0_22 = arith.constant 0 : index
    %c0_23 = arith.constant 0 : index
    %30 = vector.load %arg5[%c0_21, %c0_22, %c0_23] : memref<1x128x128xbf16, #tpu.memory_space<vmem>>, vector<1x128x128xbf16>
    %31 = vector.shape_cast %30 : vector<1x128x128xbf16> to vector<128x128xbf16>
    %cst_24 = arith.constant dense<0.000000e+00> : vector<8x128xf32>
    %32 = tpu.matmul %29, %31, %cst_24 {dimension_numbers = #tpu.dot_dimension_numbers<[1], [0], [0], [1], [0, 0, 1, 1], [], []>} : vector<8x128xbf16>, vector<128x128xbf16>, vector<8x128xf32> -> vector<8x128xf32>
    %c0_25 = arith.constant 0 : index
    %c0_26 = arith.constant 0 : index
    %c0_27 = arith.constant 0 : index
    %33 = vector.load %arg6[%c0_25, %c0_26, %c0_27] : memref<1x1x128xf32, #tpu.memory_space<vmem>>, vector<1x1x128xf32>
    %34 = vector.shape_cast %33 : vector<1x1x128xf32> to vector<1x128xf32>
    %35 = vector.broadcast %34 : vector<1x128xf32> to vector<8x128xf32>
    %36 = arith.addf %32, %35 : vector<8x128xf32>
    %37 = arith.truncf %28 : vector<8x128xf32> to vector<8x128xbf16>
    %c1_28 = arith.constant 1 : index
    %c0_29 = arith.constant 0 : index
    %c0_30 = arith.constant 0 : index
    %38 = vector.load %arg4[%c1_28, %c0_29, %c0_30] : memref<2x128x128xbf16, #tpu.memory_space<vmem>>, vector<1x128x128xbf16>
    %39 = vector.shape_cast %38 : vector<1x128x128xbf16> to vector<128x128xbf16>
    %cst_31 = arith.constant dense<0.000000e+00> : vector<8x128xf32>
    %40 = tpu.matmul %37, %39, %cst_31 {dimension_numbers = #tpu.dot_dimension_numbers<[1], [0], [0], [1], [0, 0, 1, 1], [], []>} : vector<8x128xbf16>, vector<128x128xbf16>, vector<8x128xf32> -> vector<8x128xf32>
    %41 = arith.addf %36, %40 : vector<8x128xf32>
    %42 = math.tanh %41 : vector<8x128xf32>
    %cst_32 = arith.constant 1.000000e+00 : f32
    %43 = vector.broadcast %cst_32 : f32 to vector<8x1xf32>
    %44 = arith.cmpf olt, %4, %43 : vector<8x1xf32>
    %45 = vector.shape_cast %44 : vector<8x1xi1> to vector<8x1xi1>
    %46 = vector.broadcast %45 : vector<8x1xi1> to vector<8x128xi1>
    %47 = arith.select %46, %28, %42 : vector<8x128xi1>, vector<8x128xf32>
    %c1_33 = arith.constant 1 : index
    %c0_34 = arith.constant 0 : index
    %c0_35 = arith.constant 0 : index
    %48 = vector.load %arg9[%c1_33, %c0_34, %c0_35] : memref<2x8x128xf32, #tpu.memory_space<vmem>>, vector<1x8x128xf32>
    %49 = vector.shape_cast %48 : vector<1x8x128xf32> to vector<8x128xf32>
    %50 = vector.shape_cast %47 : vector<8x128xf32> to vector<1x8x128xf32>
    tpu.vector_store %arg9[%c1_33, %c0_34, %c0_35], %50 {strides = array<i32>} : memref<2x8x128xf32, #tpu.memory_space<vmem>>, vector<1x8x128xf32>,
    %51 = arith.truncf %47 : vector<8x128xf32> to vector<8x128xbf16>
    %c0_36 = arith.constant 0 : index
    %c0_37 = arith.constant 0 : index
    %c128 = arith.constant 128 : index
    %52 = vector.load %arg7[%c0_36, %c0_37, %c128] : memref<8x8x256xbf16, #tpu.memory_space<vmem>>, vector<1x8x128xbf16>
    %53 = vector.shape_cast %52 : vector<1x8x128xbf16> to vector<8x128xbf16>
    %54 = vector.shape_cast %51 : vector<8x128xbf16> to vector<1x8x128xbf16>
    tpu.vector_store %arg7[%c0_36, %c0_37, %c128], %54 {strides = array<i32>} : memref<8x8x256xbf16, #tpu.memory_space<vmem>>, vector<1x8x128xbf16>,
    %c1_38 = arith.constant 1 : index
    %c0_39 = arith.constant 0 : index
    %c0_40 = arith.constant 0 : index
    %55 = vector.load %arg2[%c1_38, %c0_39, %c0_40] : memref<8x8x1xf32, #tpu.memory_space<vmem>>, vector<1x8x1xf32>
    %56 = vector.shape_cast %55 : vector<1x8x1xf32> to vector<8x1xf32>
    %c0_41 = arith.constant 0 : index
    %c0_42 = arith.constant 0 : index
    %c0_43 = arith.constant 0 : index
    %57 = vector.load %arg9[%c0_41, %c0_42, %c0_43] : memref<2x8x128xf32, #tpu.memory_space<vmem>>, vector<1x8x128xf32>
    %58 = vector.shape_cast %57 : vector<1x8x128xf32> to vector<8x128xf32>
    %c1_44 = arith.constant 1 : index
    %c0_45 = arith.constant 0 : index
    %c0_46 = arith.constant 0 : index
    %59 = vector.load %arg1[%c1_44, %c0_45, %c0_46] : memref<8x8x128xf32, #tpu.memory_space<vmem>>, vector<1x8x128xf32>
    %60 = vector.shape_cast %59 : vector<1x8x128xf32> to vector<8x128xf32>
    %61 = arith.truncf %58 : vector<8x128xf32> to vector<8x128xbf16>
    %c0_47 = arith.constant 0 : index
    %c0_48 = arith.constant 0 : index
    %c0_49 = arith.constant 0 : index
    %62 = vector.load %arg4[%c0_47, %c0_48, %c0_49] : memref<2x128x128xbf16, #tpu.memory_space<vmem>>, vector<1x128x128xbf16>
    %63 = vector.shape_cast %62 : vector<1x128x128xbf16> to vector<128x128xbf16>
    %cst_50 = arith.constant dense<0.000000e+00> : vector<8x128xf32>
    %64 = tpu.matmul %61, %63, %cst_50 {dimension_numbers = #tpu.dot_dimension_numbers<[1], [0], [0], [1], [0, 0, 1, 1], [], []>} : vector<8x128xbf16>, vector<128x128xbf16>, vector<8x128xf32> -> vector<8x128xf32>
    %65 = arith.addf %60, %64 : vector<8x128xf32>
    %66 = math.tanh %65 : vector<8x128xf32>
    %cst_51 = arith.constant 0.000000e+00 : f32
    %67 = vector.broadcast %cst_51 : f32 to vector<8x1xf32>
    %68 = arith.cmpf olt, %56, %67 : vector<8x1xf32>
    %69 = vector.shape_cast %68 : vector<8x1xi1> to vector<8x1xi1>
    %70 = vector.broadcast %69 : vector<8x1xi1> to vector<8x128xi1>
    %71 = arith.select %70, %58, %66 : vector<8x128xi1>, vector<8x128xf32>
    %c0_52 = arith.constant 0 : index
    %c0_53 = arith.constant 0 : index
    %c0_54 = arith.constant 0 : index
    %72 = vector.load %arg9[%c0_52, %c0_53, %c0_54] : memref<2x8x128xf32, #tpu.memory_space<vmem>>, vector<1x8x128xf32>
    %73 = vector.shape_cast %72 : vector<1x8x128xf32> to vector<8x128xf32>
    %74 = vector.shape_cast %71 : vector<8x128xf32> to vector<1x8x128xf32>
    tpu.vector_store %arg9[%c0_52, %c0_53, %c0_54], %74 {strides = array<i32>} : memref<2x8x128xf32, #tpu.memory_space<vmem>>, vector<1x8x128xf32>,
    %75 = arith.truncf %71 : vector<8x128xf32> to vector<8x128xbf16>
    %c1_55 = arith.constant 1 : index
    %c0_56 = arith.constant 0 : index
    %c0_57 = arith.constant 0 : index
    %76 = vector.load %arg7[%c1_55, %c0_56, %c0_57] : memref<8x8x256xbf16, #tpu.memory_space<vmem>>, vector<1x8x128xbf16>
    %77 = vector.shape_cast %76 : vector<1x8x128xbf16> to vector<8x128xbf16>
    %78 = vector.shape_cast %75 : vector<8x128xbf16> to vector<1x8x128xbf16>
    tpu.vector_store %arg7[%c1_55, %c0_56, %c0_57], %78 {strides = array<i32>} : memref<8x8x256xbf16, #tpu.memory_space<vmem>>, vector<1x8x128xbf16>,
    %c1_58 = arith.constant 1 : index
    %c0_59 = arith.constant 0 : index
    %c0_60 = arith.constant 0 : index
    %79 = vector.load %arg9[%c1_58, %c0_59, %c0_60] : memref<2x8x128xf32, #tpu.memory_space<vmem>>, vector<1x8x128xf32>
    %80 = vector.shape_cast %79 : vector<1x8x128xf32> to vector<8x128xf32>
    %81 = arith.truncf %71 : vector<8x128xf32> to vector<8x128xbf16>
    %c0_61 = arith.constant 0 : index
    %c0_62 = arith.constant 0 : index
    %c0_63 = arith.constant 0 : index
    %82 = vector.load %arg5[%c0_61, %c0_62, %c0_63] : memref<1x128x128xbf16, #tpu.memory_space<vmem>>, vector<1x128x128xbf16>
    %83 = vector.shape_cast %82 : vector<1x128x128xbf16> to vector<128x128xbf16>
    %cst_64 = arith.constant dense<0.000000e+00> : vector<8x128xf32>
    %84 = tpu.matmul %81, %83, %cst_64 {dimension_numbers = #tpu.dot_dimension_numbers<[1], [0], [0], [1], [0, 0, 1, 1], [], []>} : vector<8x128xbf16>, vector<128x128xbf16>, vector<8x128xf32> -> vector<8x128xf32>
    %c0_65 = arith.constant 0 : index
    %c0_66 = arith.constant 0 : index
    %c0_67 = arith.constant 0 : index
    %85 = vector.load %arg6[%c0_65, %c0_66, %c0_67] : memref<1x1x128xf32, #tpu.memory_space<vmem>>, vector<1x1x128xf32>
    %86 = vector.shape_cast %85 : vector<1x1x128xf32> to vector<1x128xf32>
    %87 = vector.broadcast %86 : vector<1x128xf32> to vector<8x128xf32>
    %88 = arith.addf %84, %87 : vector<8x128xf32>
    %89 = arith.truncf %80 : vector<8x128xf32> to vector<8x128xbf16>
    %c1_68 = arith.constant 1 : index
    %c0_69 = arith.constant 0 : index
    %c0_70 = arith.constant 0 : index
    %90 = vector.load %arg4[%c1_68, %c0_69, %c0_70] : memref<2x128x128xbf16, #tpu.memory_space<vmem>>, vector<1x128x128xbf16>
    %91 = vector.shape_cast %90 : vector<1x128x128xbf16> to vector<128x128xbf16>
    %cst_71 = arith.constant dense<0.000000e+00> : vector<8x128xf32>
    %92 = tpu.matmul %89, %91, %cst_71 {dimension_numbers = #tpu.dot_dimension_numbers<[1], [0], [0], [1], [0, 0, 1, 1], [], []>} : vector<8x128xbf16>, vector<128x128xbf16>, vector<8x128xf32> -> vector<8x128xf32>
    %93 = arith.addf %88, %92 : vector<8x128xf32>
    %94 = math.tanh %93 : vector<8x128xf32>
    %cst_72 = arith.constant 1.000000e+00 : f32
    %95 = vector.broadcast %cst_72 : f32 to vector<8x1xf32>
    %96 = arith.cmpf olt, %56, %95 : vector<8x1xf32>
    %97 = vector.shape_cast %96 : vector<8x1xi1> to vector<8x1xi1>
    %98 = vector.broadcast %97 : vector<8x1xi1> to vector<8x128xi1>
    %99 = arith.select %98, %80, %94 : vector<8x128xi1>, vector<8x128xf32>
    %c1_73 = arith.constant 1 : index
    %c0_74 = arith.constant 0 : index
    %c0_75 = arith.constant 0 : index
    %100 = vector.load %arg9[%c1_73, %c0_74, %c0_75] : memref<2x8x128xf32, #tpu.memory_space<vmem>>, vector<1x8x128xf32>
    %101 = vector.shape_cast %100 : vector<1x8x128xf32> to vector<8x128xf32>
    %102 = vector.shape_cast %99 : vector<8x128xf32> to vector<1x8x128xf32>
    tpu.vector_store %arg9[%c1_73, %c0_74, %c0_75], %102 {strides = array<i32>} : memref<2x8x128xf32, #tpu.memory_space<vmem>>, vector<1x8x128xf32>,
    %103 = arith.truncf %99 : vector<8x128xf32> to vector<8x128xbf16>
    %c1_76 = arith.constant 1 : index
    %c0_77 = arith.constant 0 : index
    %c128_78 = arith.constant 128 : index
    %104 = vector.load %arg7[%c1_76, %c0_77, %c128_78] : memref<8x8x256xbf16, #tpu.memory_space<vmem>>, vector<1x8x128xbf16>
    %105 = vector.shape_cast %104 : vector<1x8x128xbf16> to vector<8x128xbf16>
    %106 = vector.shape_cast %103 : vector<8x128xbf16> to vector<1x8x128xbf16>
    tpu.vector_store %arg7[%c1_76, %c0_77, %c128_78], %106 {strides = array<i32>} : memref<8x8x256xbf16, #tpu.memory_space<vmem>>, vector<1x8x128xbf16>,
    %c2 = arith.constant 2 : index
    %c0_79 = arith.constant 0 : index
    %c0_80 = arith.constant 0 : index
    %107 = vector.load %arg2[%c2, %c0_79, %c0_80] : memref<8x8x1xf32, #tpu.memory_space<vmem>>, vector<1x8x1xf32>
    %108 = vector.shape_cast %107 : vector<1x8x1xf32> to vector<8x1xf32>
    %c0_81 = arith.constant 0 : index
    %c0_82 = arith.constant 0 : index
    %c0_83 = arith.constant 0 : index
    %109 = vector.load %arg9[%c0_81, %c0_82, %c0_83] : memref<2x8x128xf32, #tpu.memory_space<vmem>>, vector<1x8x128xf32>
    %110 = vector.shape_cast %109 : vector<1x8x128xf32> to vector<8x128xf32>
    %c2_84 = arith.constant 2 : index
    %c0_85 = arith.constant 0 : index
    %c0_86 = arith.constant 0 : index
    %111 = vector.load %arg1[%c2_84, %c0_85, %c0_86] : memref<8x8x128xf32, #tpu.memory_space<vmem>>, vector<1x8x128xf32>
    %112 = vector.shape_cast %111 : vector<1x8x128xf32> to vector<8x128xf32>
    %113 = arith.truncf %110 : vector<8x128xf32> to vector<8x128xbf16>
    %c0_87 = arith.constant 0 : index
    %c0_88 = arith.constant 0 : index
    %c0_89 = arith.constant 0 : index
    %114 = vector.load %arg4[%c0_87, %c0_88, %c0_89] : memref<2x128x128xbf16, #tpu.memory_space<vmem>>, vector<1x128x128xbf16>
    %115 = vector.shape_cast %114 : vector<1x128x128xbf16> to vector<128x128xbf16>
    %cst_90 = arith.constant dense<0.000000e+00> : vector<8x128xf32>
    %116 = tpu.matmul %113, %115, %cst_90 {dimension_numbers = #tpu.dot_dimension_numbers<[1], [0], [0], [1], [0, 0, 1, 1], [], []>} : vector<8x128xbf16>, vector<128x128xbf16>, vector<8x128xf32> -> vector<8x128xf32>
    %117 = arith.addf %112, %116 : vector<8x128xf32>
    %118 = math.tanh %117 : vector<8x128xf32>
    %cst_91 = arith.constant 0.000000e+00 : f32
    %119 = vector.broadcast %cst_91 : f32 to vector<8x1xf32>
    %120 = arith.cmpf olt, %108, %119 : vector<8x1xf32>
    %121 = vector.shape_cast %120 : vector<8x1xi1> to vector<8x1xi1>
    %122 = vector.broadcast %121 : vector<8x1xi1> to vector<8x128xi1>
    %123 = arith.select %122, %110, %118 : vector<8x128xi1>, vector<8x128xf32>
    %c0_92 = arith.constant 0 : index
    %c0_93 = arith.constant 0 : index
    %c0_94 = arith.constant 0 : index
    %124 = vector.load %arg9[%c0_92, %c0_93, %c0_94] : memref<2x8x128xf32, #tpu.memory_space<vmem>>, vector<1x8x128xf32>
    %125 = vector.shape_cast %124 : vector<1x8x128xf32> to vector<8x128xf32>
    %126 = vector.shape_cast %123 : vector<8x128xf32> to vector<1x8x128xf32>
    tpu.vector_store %arg9[%c0_92, %c0_93, %c0_94], %126 {strides = array<i32>} : memref<2x8x128xf32, #tpu.memory_space<vmem>>, vector<1x8x128xf32>,
    %127 = arith.truncf %123 : vector<8x128xf32> to vector<8x128xbf16>
    %c2_95 = arith.constant 2 : index
    %c0_96 = arith.constant 0 : index
    %c0_97 = arith.constant 0 : index
    %128 = vector.load %arg7[%c2_95, %c0_96, %c0_97] : memref<8x8x256xbf16, #tpu.memory_space<vmem>>, vector<1x8x128xbf16>
    %129 = vector.shape_cast %128 : vector<1x8x128xbf16> to vector<8x128xbf16>
    %130 = vector.shape_cast %127 : vector<8x128xbf16> to vector<1x8x128xbf16>
    tpu.vector_store %arg7[%c2_95, %c0_96, %c0_97], %130 {strides = array<i32>} : memref<8x8x256xbf16, #tpu.memory_space<vmem>>, vector<1x8x128xbf16>,
    %c1_98 = arith.constant 1 : index
    %c0_99 = arith.constant 0 : index
    %c0_100 = arith.constant 0 : index
    %131 = vector.load %arg9[%c1_98, %c0_99, %c0_100] : memref<2x8x128xf32, #tpu.memory_space<vmem>>, vector<1x8x128xf32>
    %132 = vector.shape_cast %131 : vector<1x8x128xf32> to vector<8x128xf32>
    %133 = arith.truncf %123 : vector<8x128xf32> to vector<8x128xbf16>
    %c0_101 = arith.constant 0 : index
    %c0_102 = arith.constant 0 : index
    %c0_103 = arith.constant 0 : index
    %134 = vector.load %arg5[%c0_101, %c0_102, %c0_103] : memref<1x128x128xbf16, #tpu.memory_space<vmem>>, vector<1x128x128xbf16>
    %135 = vector.shape_cast %134 : vector<1x128x128xbf16> to vector<128x128xbf16>
    %cst_104 = arith.constant dense<0.000000e+00> : vector<8x128xf32>
    %136 = tpu.matmul %133, %135, %cst_104 {dimension_numbers = #tpu.dot_dimension_numbers<[1], [0], [0], [1], [0, 0, 1, 1], [], []>} : vector<8x128xbf16>, vector<128x128xbf16>, vector<8x128xf32> -> vector<8x128xf32>
    %c0_105 = arith.constant 0 : index
    %c0_106 = arith.constant 0 : index
    %c0_107 = arith.constant 0 : index
    %137 = vector.load %arg6[%c0_105, %c0_106, %c0_107] : memref<1x1x128xf32, #tpu.memory_space<vmem>>, vector<1x1x128xf32>
    %138 = vector.shape_cast %137 : vector<1x1x128xf32> to vector<1x128xf32>
    %139 = vector.broadcast %138 : vector<1x128xf32> to vector<8x128xf32>
    %140 = arith.addf %136, %139 : vector<8x128xf32>
    %141 = arith.truncf %132 : vector<8x128xf32> to vector<8x128xbf16>
    %c1_108 = arith.constant 1 : index
    %c0_109 = arith.constant 0 : index
    %c0_110 = arith.constant 0 : index
    %142 = vector.load %arg4[%c1_108, %c0_109, %c0_110] : memref<2x128x128xbf16, #tpu.memory_space<vmem>>, vector<1x128x128xbf16>
    %143 = vector.shape_cast %142 : vector<1x128x128xbf16> to vector<128x128xbf16>
    %cst_111 = arith.constant dense<0.000000e+00> : vector<8x128xf32>
    %144 = tpu.matmul %141, %143, %cst_111 {dimension_numbers = #tpu.dot_dimension_numbers<[1], [0], [0], [1], [0, 0, 1, 1], [], []>} : vector<8x128xbf16>, vector<128x128xbf16>, vector<8x128xf32> -> vector<8x128xf32>
    %145 = arith.addf %140, %144 : vector<8x128xf32>
    %146 = math.tanh %145 : vector<8x128xf32>
    %cst_112 = arith.constant 1.000000e+00 : f32
    %147 = vector.broadcast %cst_112 : f32 to vector<8x1xf32>
    %148 = arith.cmpf olt, %108, %147 : vector<8x1xf32>
    %149 = vector.shape_cast %148 : vector<8x1xi1> to vector<8x1xi1>
    %150 = vector.broadcast %149 : vector<8x1xi1> to vector<8x128xi1>
    %151 = arith.select %150, %132, %146 : vector<8x128xi1>, vector<8x128xf32>
    %c1_113 = arith.constant 1 : index
    %c0_114 = arith.constant 0 : index
    %c0_115 = arith.constant 0 : index
    %152 = vector.load %arg9[%c1_113, %c0_114, %c0_115] : memref<2x8x128xf32, #tpu.memory_space<vmem>>, vector<1x8x128xf32>
    %153 = vector.shape_cast %152 : vector<1x8x128xf32> to vector<8x128xf32>
    %154 = vector.shape_cast %151 : vector<8x128xf32> to vector<1x8x128xf32>
    tpu.vector_store %arg9[%c1_113, %c0_114, %c0_115], %154 {strides = array<i32>} : memref<2x8x128xf32, #tpu.memory_space<vmem>>, vector<1x8x128xf32>,
    %155 = arith.truncf %151 : vector<8x128xf32> to vector<8x128xbf16>
    %c2_116 = arith.constant 2 : index
    %c0_117 = arith.constant 0 : index
    %c128_118 = arith.constant 128 : index
    %156 = vector.load %arg7[%c2_116, %c0_117, %c128_118] : memref<8x8x256xbf16, #tpu.memory_space<vmem>>, vector<1x8x128xbf16>
    %157 = vector.shape_cast %156 : vector<1x8x128xbf16> to vector<8x128xbf16>
    %158 = vector.shape_cast %155 : vector<8x128xbf16> to vector<1x8x128xbf16>
    tpu.vector_store %arg7[%c2_116, %c0_117, %c128_118], %158 {strides = array<i32>} : memref<8x8x256xbf16, #tpu.memory_space<vmem>>, vector<1x8x128xbf16>,
    %c3 = arith.constant 3 : index
    %c0_119 = arith.constant 0 : index
    %c0_120 = arith.constant 0 : index
    %159 = vector.load %arg2[%c3, %c0_119, %c0_120] : memref<8x8x1xf32, #tpu.memory_space<vmem>>, vector<1x8x1xf32>
    %160 = vector.shape_cast %159 : vector<1x8x1xf32> to vector<8x1xf32>
    %c0_121 = arith.constant 0 : index
    %c0_122 = arith.constant 0 : index
    %c0_123 = arith.constant 0 : index
    %161 = vector.load %arg9[%c0_121, %c0_122, %c0_123] : memref<2x8x128xf32, #tpu.memory_space<vmem>>, vector<1x8x128xf32>
    %162 = vector.shape_cast %161 : vector<1x8x128xf32> to vector<8x128xf32>
    %c3_124 = arith.constant 3 : index
    %c0_125 = arith.constant 0 : index
    %c0_126 = arith.constant 0 : index
    %163 = vector.load %arg1[%c3_124, %c0_125, %c0_126] : memref<8x8x128xf32, #tpu.memory_space<vmem>>, vector<1x8x128xf32>
    %164 = vector.shape_cast %163 : vector<1x8x128xf32> to vector<8x128xf32>
    %165 = arith.truncf %162 : vector<8x128xf32> to vector<8x128xbf16>
    %c0_127 = arith.constant 0 : index
    %c0_128 = arith.constant 0 : index
    %c0_129 = arith.constant 0 : index
    %166 = vector.load %arg4[%c0_127, %c0_128, %c0_129] : memref<2x128x128xbf16, #tpu.memory_space<vmem>>, vector<1x128x128xbf16>
    %167 = vector.shape_cast %166 : vector<1x128x128xbf16> to vector<128x128xbf16>
    %cst_130 = arith.constant dense<0.000000e+00> : vector<8x128xf32>
    %168 = tpu.matmul %165, %167, %cst_130 {dimension_numbers = #tpu.dot_dimension_numbers<[1], [0], [0], [1], [0, 0, 1, 1], [], []>} : vector<8x128xbf16>, vector<128x128xbf16>, vector<8x128xf32> -> vector<8x128xf32>
    %169 = arith.addf %164, %168 : vector<8x128xf32>
    %170 = math.tanh %169 : vector<8x128xf32>
    %cst_131 = arith.constant 0.000000e+00 : f32
    %171 = vector.broadcast %cst_131 : f32 to vector<8x1xf32>
    %172 = arith.cmpf olt, %160, %171 : vector<8x1xf32>
    %173 = vector.shape_cast %172 : vector<8x1xi1> to vector<8x1xi1>
    %174 = vector.broadcast %173 : vector<8x1xi1> to vector<8x128xi1>
    %175 = arith.select %174, %162, %170 : vector<8x128xi1>, vector<8x128xf32>
    %c0_132 = arith.constant 0 : index
    %c0_133 = arith.constant 0 : index
    %c0_134 = arith.constant 0 : index
    %176 = vector.load %arg9[%c0_132, %c0_133, %c0_134] : memref<2x8x128xf32, #tpu.memory_space<vmem>>, vector<1x8x128xf32>
    %177 = vector.shape_cast %176 : vector<1x8x128xf32> to vector<8x128xf32>
    %178 = vector.shape_cast %175 : vector<8x128xf32> to vector<1x8x128xf32>
    tpu.vector_store %arg9[%c0_132, %c0_133, %c0_134], %178 {strides = array<i32>} : memref<2x8x128xf32, #tpu.memory_space<vmem>>, vector<1x8x128xf32>,
    %179 = arith.truncf %175 : vector<8x128xf32> to vector<8x128xbf16>
    %c3_135 = arith.constant 3 : index
    %c0_136 = arith.constant 0 : index
    %c0_137 = arith.constant 0 : index
    %180 = vector.load %arg7[%c3_135, %c0_136, %c0_137] : memref<8x8x256xbf16, #tpu.memory_space<vmem>>, vector<1x8x128xbf16>
    %181 = vector.shape_cast %180 : vector<1x8x128xbf16> to vector<8x128xbf16>
    %182 = vector.shape_cast %179 : vector<8x128xbf16> to vector<1x8x128xbf16>
    tpu.vector_store %arg7[%c3_135, %c0_136, %c0_137], %182 {strides = array<i32>} : memref<8x8x256xbf16, #tpu.memory_space<vmem>>, vector<1x8x128xbf16>,
    %c1_138 = arith.constant 1 : index
    %c0_139 = arith.constant 0 : index
    %c0_140 = arith.constant 0 : index
    %183 = vector.load %arg9[%c1_138, %c0_139, %c0_140] : memref<2x8x128xf32, #tpu.memory_space<vmem>>, vector<1x8x128xf32>
    %184 = vector.shape_cast %183 : vector<1x8x128xf32> to vector<8x128xf32>
    %185 = arith.truncf %175 : vector<8x128xf32> to vector<8x128xbf16>
    %c0_141 = arith.constant 0 : index
    %c0_142 = arith.constant 0 : index
    %c0_143 = arith.constant 0 : index
    %186 = vector.load %arg5[%c0_141, %c0_142, %c0_143] : memref<1x128x128xbf16, #tpu.memory_space<vmem>>, vector<1x128x128xbf16>
    %187 = vector.shape_cast %186 : vector<1x128x128xbf16> to vector<128x128xbf16>
    %cst_144 = arith.constant dense<0.000000e+00> : vector<8x128xf32>
    %188 = tpu.matmul %185, %187, %cst_144 {dimension_numbers = #tpu.dot_dimension_numbers<[1], [0], [0], [1], [0, 0, 1, 1], [], []>} : vector<8x128xbf16>, vector<128x128xbf16>, vector<8x128xf32> -> vector<8x128xf32>
    %c0_145 = arith.constant 0 : index
    %c0_146 = arith.constant 0 : index
    %c0_147 = arith.constant 0 : index
    %189 = vector.load %arg6[%c0_145, %c0_146, %c0_147] : memref<1x1x128xf32, #tpu.memory_space<vmem>>, vector<1x1x128xf32>
    %190 = vector.shape_cast %189 : vector<1x1x128xf32> to vector<1x128xf32>
    %191 = vector.broadcast %190 : vector<1x128xf32> to vector<8x128xf32>
    %192 = arith.addf %188, %191 : vector<8x128xf32>
    %193 = arith.truncf %184 : vector<8x128xf32> to vector<8x128xbf16>
    %c1_148 = arith.constant 1 : index
    %c0_149 = arith.constant 0 : index
    %c0_150 = arith.constant 0 : index
    %194 = vector.load %arg4[%c1_148, %c0_149, %c0_150] : memref<2x128x128xbf16, #tpu.memory_space<vmem>>, vector<1x128x128xbf16>
    %195 = vector.shape_cast %194 : vector<1x128x128xbf16> to vector<128x128xbf16>
    %cst_151 = arith.constant dense<0.000000e+00> : vector<8x128xf32>
    %196 = tpu.matmul %193, %195, %cst_151 {dimension_numbers = #tpu.dot_dimension_numbers<[1], [0], [0], [1], [0, 0, 1, 1], [], []>} : vector<8x128xbf16>, vector<128x128xbf16>, vector<8x128xf32> -> vector<8x128xf32>
    %197 = arith.addf %192, %196 : vector<8x128xf32>
    %198 = math.tanh %197 : vector<8x128xf32>
    %cst_152 = arith.constant 1.000000e+00 : f32
    %199 = vector.broadcast %cst_152 : f32 to vector<8x1xf32>
    %200 = arith.cmpf olt, %160, %199 : vector<8x1xf32>
    %201 = vector.shape_cast %200 : vector<8x1xi1> to vector<8x1xi1>
    %202 = vector.broadcast %201 : vector<8x1xi1> to vector<8x128xi1>
    %203 = arith.select %202, %184, %198 : vector<8x128xi1>, vector<8x128xf32>
    %c1_153 = arith.constant 1 : index
    %c0_154 = arith.constant 0 : index
    %c0_155 = arith.constant 0 : index
    %204 = vector.load %arg9[%c1_153, %c0_154, %c0_155] : memref<2x8x128xf32, #tpu.memory_space<vmem>>, vector<1x8x128xf32>
    %205 = vector.shape_cast %204 : vector<1x8x128xf32> to vector<8x128xf32>
    %206 = vector.shape_cast %203 : vector<8x128xf32> to vector<1x8x128xf32>
    tpu.vector_store %arg9[%c1_153, %c0_154, %c0_155], %206 {strides = array<i32>} : memref<2x8x128xf32, #tpu.memory_space<vmem>>, vector<1x8x128xf32>,
    %207 = arith.truncf %203 : vector<8x128xf32> to vector<8x128xbf16>
    %c3_156 = arith.constant 3 : index
    %c0_157 = arith.constant 0 : index
    %c128_158 = arith.constant 128 : index
    %208 = vector.load %arg7[%c3_156, %c0_157, %c128_158] : memref<8x8x256xbf16, #tpu.memory_space<vmem>>, vector<1x8x128xbf16>
    %209 = vector.shape_cast %208 : vector<1x8x128xbf16> to vector<8x128xbf16>
    %210 = vector.shape_cast %207 : vector<8x128xbf16> to vector<1x8x128xbf16>
    tpu.vector_store %arg7[%c3_156, %c0_157, %c128_158], %210 {strides = array<i32>} : memref<8x8x256xbf16, #tpu.memory_space<vmem>>, vector<1x8x128xbf16>,
    %c4 = arith.constant 4 : index
    %c0_159 = arith.constant 0 : index
    %c0_160 = arith.constant 0 : index
    %211 = vector.load %arg2[%c4, %c0_159, %c0_160] : memref<8x8x1xf32, #tpu.memory_space<vmem>>, vector<1x8x1xf32>
    %212 = vector.shape_cast %211 : vector<1x8x1xf32> to vector<8x1xf32>
    %c0_161 = arith.constant 0 : index
    %c0_162 = arith.constant 0 : index
    %c0_163 = arith.constant 0 : index
    %213 = vector.load %arg9[%c0_161, %c0_162, %c0_163] : memref<2x8x128xf32, #tpu.memory_space<vmem>>, vector<1x8x128xf32>
    %214 = vector.shape_cast %213 : vector<1x8x128xf32> to vector<8x128xf32>
    %c4_164 = arith.constant 4 : index
    %c0_165 = arith.constant 0 : index
    %c0_166 = arith.constant 0 : index
    %215 = vector.load %arg1[%c4_164, %c0_165, %c0_166] : memref<8x8x128xf32, #tpu.memory_space<vmem>>, vector<1x8x128xf32>
    %216 = vector.shape_cast %215 : vector<1x8x128xf32> to vector<8x128xf32>
    %217 = arith.truncf %214 : vector<8x128xf32> to vector<8x128xbf16>
    %c0_167 = arith.constant 0 : index
    %c0_168 = arith.constant 0 : index
    %c0_169 = arith.constant 0 : index
    %218 = vector.load %arg4[%c0_167, %c0_168, %c0_169] : memref<2x128x128xbf16, #tpu.memory_space<vmem>>, vector<1x128x128xbf16>
    %219 = vector.shape_cast %218 : vector<1x128x128xbf16> to vector<128x128xbf16>
    %cst_170 = arith.constant dense<0.000000e+00> : vector<8x128xf32>
    %220 = tpu.matmul %217, %219, %cst_170 {dimension_numbers = #tpu.dot_dimension_numbers<[1], [0], [0], [1], [0, 0, 1, 1], [], []>} : vector<8x128xbf16>, vector<128x128xbf16>, vector<8x128xf32> -> vector<8x128xf32>
    %221 = arith.addf %216, %220 : vector<8x128xf32>
    %222 = math.tanh %221 : vector<8x128xf32>
    %cst_171 = arith.constant 0.000000e+00 : f32
    %223 = vector.broadcast %cst_171 : f32 to vector<8x1xf32>
    %224 = arith.cmpf olt, %212, %223 : vector<8x1xf32>
    %225 = vector.shape_cast %224 : vector<8x1xi1> to vector<8x1xi1>
    %226 = vector.broadcast %225 : vector<8x1xi1> to vector<8x128xi1>
    %227 = arith.select %226, %214, %222 : vector<8x128xi1>, vector<8x128xf32>
    %c0_172 = arith.constant 0 : index
    %c0_173 = arith.constant 0 : index
    %c0_174 = arith.constant 0 : index
    %228 = vector.load %arg9[%c0_172, %c0_173, %c0_174] : memref<2x8x128xf32, #tpu.memory_space<vmem>>, vector<1x8x128xf32>
    %229 = vector.shape_cast %228 : vector<1x8x128xf32> to vector<8x128xf32>
    %230 = vector.shape_cast %227 : vector<8x128xf32> to vector<1x8x128xf32>
    tpu.vector_store %arg9[%c0_172, %c0_173, %c0_174], %230 {strides = array<i32>} : memref<2x8x128xf32, #tpu.memory_space<vmem>>, vector<1x8x128xf32>,
    %231 = arith.truncf %227 : vector<8x128xf32> to vector<8x128xbf16>
    %c4_175 = arith.constant 4 : index
    %c0_176 = arith.constant 0 : index
    %c0_177 = arith.constant 0 : index
    %232 = vector.load %arg7[%c4_175, %c0_176, %c0_177] : memref<8x8x256xbf16, #tpu.memory_space<vmem>>, vector<1x8x128xbf16>
    %233 = vector.shape_cast %232 : vector<1x8x128xbf16> to vector<8x128xbf16>
    %234 = vector.shape_cast %231 : vector<8x128xbf16> to vector<1x8x128xbf16>
    tpu.vector_store %arg7[%c4_175, %c0_176, %c0_177], %234 {strides = array<i32>} : memref<8x8x256xbf16, #tpu.memory_space<vmem>>, vector<1x8x128xbf16>,
    %c1_178 = arith.constant 1 : index
    %c0_179 = arith.constant 0 : index
    %c0_180 = arith.constant 0 : index
    %235 = vector.load %arg9[%c1_178, %c0_179, %c0_180] : memref<2x8x128xf32, #tpu.memory_space<vmem>>, vector<1x8x128xf32>
    %236 = vector.shape_cast %235 : vector<1x8x128xf32> to vector<8x128xf32>
    %237 = arith.truncf %227 : vector<8x128xf32> to vector<8x128xbf16>
    %c0_181 = arith.constant 0 : index
    %c0_182 = arith.constant 0 : index
    %c0_183 = arith.constant 0 : index
    %238 = vector.load %arg5[%c0_181, %c0_182, %c0_183] : memref<1x128x128xbf16, #tpu.memory_space<vmem>>, vector<1x128x128xbf16>
    %239 = vector.shape_cast %238 : vector<1x128x128xbf16> to vector<128x128xbf16>
    %cst_184 = arith.constant dense<0.000000e+00> : vector<8x128xf32>
    %240 = tpu.matmul %237, %239, %cst_184 {dimension_numbers = #tpu.dot_dimension_numbers<[1], [0], [0], [1], [0, 0, 1, 1], [], []>} : vector<8x128xbf16>, vector<128x128xbf16>, vector<8x128xf32> -> vector<8x128xf32>
    %c0_185 = arith.constant 0 : index
    %c0_186 = arith.constant 0 : index
    %c0_187 = arith.constant 0 : index
    %241 = vector.load %arg6[%c0_185, %c0_186, %c0_187] : memref<1x1x128xf32, #tpu.memory_space<vmem>>, vector<1x1x128xf32>
    %242 = vector.shape_cast %241 : vector<1x1x128xf32> to vector<1x128xf32>
    %243 = vector.broadcast %242 : vector<1x128xf32> to vector<8x128xf32>
    %244 = arith.addf %240, %243 : vector<8x128xf32>
    %245 = arith.truncf %236 : vector<8x128xf32> to vector<8x128xbf16>
    %c1_188 = arith.constant 1 : index
    %c0_189 = arith.constant 0 : index
    %c0_190 = arith.constant 0 : index
    %246 = vector.load %arg4[%c1_188, %c0_189, %c0_190] : memref<2x128x128xbf16, #tpu.memory_space<vmem>>, vector<1x128x128xbf16>
    %247 = vector.shape_cast %246 : vector<1x128x128xbf16> to vector<128x128xbf16>
    %cst_191 = arith.constant dense<0.000000e+00> : vector<8x128xf32>
    %248 = tpu.matmul %245, %247, %cst_191 {dimension_numbers = #tpu.dot_dimension_numbers<[1], [0], [0], [1], [0, 0, 1, 1], [], []>} : vector<8x128xbf16>, vector<128x128xbf16>, vector<8x128xf32> -> vector<8x128xf32>
    %249 = arith.addf %244, %248 : vector<8x128xf32>
    %250 = math.tanh %249 : vector<8x128xf32>
    %cst_192 = arith.constant 1.000000e+00 : f32
    %251 = vector.broadcast %cst_192 : f32 to vector<8x1xf32>
    %252 = arith.cmpf olt, %212, %251 : vector<8x1xf32>
    %253 = vector.shape_cast %252 : vector<8x1xi1> to vector<8x1xi1>
    %254 = vector.broadcast %253 : vector<8x1xi1> to vector<8x128xi1>
    %255 = arith.select %254, %236, %250 : vector<8x128xi1>, vector<8x128xf32>
    %c1_193 = arith.constant 1 : index
    %c0_194 = arith.constant 0 : index
    %c0_195 = arith.constant 0 : index
    %256 = vector.load %arg9[%c1_193, %c0_194, %c0_195] : memref<2x8x128xf32, #tpu.memory_space<vmem>>, vector<1x8x128xf32>
    %257 = vector.shape_cast %256 : vector<1x8x128xf32> to vector<8x128xf32>
    %258 = vector.shape_cast %255 : vector<8x128xf32> to vector<1x8x128xf32>
    tpu.vector_store %arg9[%c1_193, %c0_194, %c0_195], %258 {strides = array<i32>} : memref<2x8x128xf32, #tpu.memory_space<vmem>>, vector<1x8x128xf32>,
    %259 = arith.truncf %255 : vector<8x128xf32> to vector<8x128xbf16>
    %c4_196 = arith.constant 4 : index
    %c0_197 = arith.constant 0 : index
    %c128_198 = arith.constant 128 : index
    %260 = vector.load %arg7[%c4_196, %c0_197, %c128_198] : memref<8x8x256xbf16, #tpu.memory_space<vmem>>, vector<1x8x128xbf16>
    %261 = vector.shape_cast %260 : vector<1x8x128xbf16> to vector<8x128xbf16>
    %262 = vector.shape_cast %259 : vector<8x128xbf16> to vector<1x8x128xbf16>
    tpu.vector_store %arg7[%c4_196, %c0_197, %c128_198], %262 {strides = array<i32>} : memref<8x8x256xbf16, #tpu.memory_space<vmem>>, vector<1x8x128xbf16>,
    %c5 = arith.constant 5 : index
    %c0_199 = arith.constant 0 : index
    %c0_200 = arith.constant 0 : index
    %263 = vector.load %arg2[%c5, %c0_199, %c0_200] : memref<8x8x1xf32, #tpu.memory_space<vmem>>, vector<1x8x1xf32>
    %264 = vector.shape_cast %263 : vector<1x8x1xf32> to vector<8x1xf32>
    %c0_201 = arith.constant 0 : index
    %c0_202 = arith.constant 0 : index
    %c0_203 = arith.constant 0 : index
    %265 = vector.load %arg9[%c0_201, %c0_202, %c0_203] : memref<2x8x128xf32, #tpu.memory_space<vmem>>, vector<1x8x128xf32>
    %266 = vector.shape_cast %265 : vector<1x8x128xf32> to vector<8x128xf32>
    %c5_204 = arith.constant 5 : index
    %c0_205 = arith.constant 0 : index
    %c0_206 = arith.constant 0 : index
    %267 = vector.load %arg1[%c5_204, %c0_205, %c0_206] : memref<8x8x128xf32, #tpu.memory_space<vmem>>, vector<1x8x128xf32>
    %268 = vector.shape_cast %267 : vector<1x8x128xf32> to vector<8x128xf32>
    %269 = arith.truncf %266 : vector<8x128xf32> to vector<8x128xbf16>
    %c0_207 = arith.constant 0 : index
    %c0_208 = arith.constant 0 : index
    %c0_209 = arith.constant 0 : index
    %270 = vector.load %arg4[%c0_207, %c0_208, %c0_209] : memref<2x128x128xbf16, #tpu.memory_space<vmem>>, vector<1x128x128xbf16>
    %271 = vector.shape_cast %270 : vector<1x128x128xbf16> to vector<128x128xbf16>
    %cst_210 = arith.constant dense<0.000000e+00> : vector<8x128xf32>
    %272 = tpu.matmul %269, %271, %cst_210 {dimension_numbers = #tpu.dot_dimension_numbers<[1], [0], [0], [1], [0, 0, 1, 1], [], []>} : vector<8x128xbf16>, vector<128x128xbf16>, vector<8x128xf32> -> vector<8x128xf32>
    %273 = arith.addf %268, %272 : vector<8x128xf32>
    %274 = math.tanh %273 : vector<8x128xf32>
    %cst_211 = arith.constant 0.000000e+00 : f32
    %275 = vector.broadcast %cst_211 : f32 to vector<8x1xf32>
    %276 = arith.cmpf olt, %264, %275 : vector<8x1xf32>
    %277 = vector.shape_cast %276 : vector<8x1xi1> to vector<8x1xi1>
    %278 = vector.broadcast %277 : vector<8x1xi1> to vector<8x128xi1>
    %279 = arith.select %278, %266, %274 : vector<8x128xi1>, vector<8x128xf32>
    %c0_212 = arith.constant 0 : index
    %c0_213 = arith.constant 0 : index
    %c0_214 = arith.constant 0 : index
    %280 = vector.load %arg9[%c0_212, %c0_213, %c0_214] : memref<2x8x128xf32, #tpu.memory_space<vmem>>, vector<1x8x128xf32>
    %281 = vector.shape_cast %280 : vector<1x8x128xf32> to vector<8x128xf32>
    %282 = vector.shape_cast %279 : vector<8x128xf32> to vector<1x8x128xf32>
    tpu.vector_store %arg9[%c0_212, %c0_213, %c0_214], %282 {strides = array<i32>} : memref<2x8x128xf32, #tpu.memory_space<vmem>>, vector<1x8x128xf32>,
    %283 = arith.truncf %279 : vector<8x128xf32> to vector<8x128xbf16>
    %c5_215 = arith.constant 5 : index
    %c0_216 = arith.constant 0 : index
    %c0_217 = arith.constant 0 : index
    %284 = vector.load %arg7[%c5_215, %c0_216, %c0_217] : memref<8x8x256xbf16, #tpu.memory_space<vmem>>, vector<1x8x128xbf16>
    %285 = vector.shape_cast %284 : vector<1x8x128xbf16> to vector<8x128xbf16>
    %286 = vector.shape_cast %283 : vector<8x128xbf16> to vector<1x8x128xbf16>
    tpu.vector_store %arg7[%c5_215, %c0_216, %c0_217], %286 {strides = array<i32>} : memref<8x8x256xbf16, #tpu.memory_space<vmem>>, vector<1x8x128xbf16>,
    %c1_218 = arith.constant 1 : index
    %c0_219 = arith.constant 0 : index
    %c0_220 = arith.constant 0 : index
    %287 = vector.load %arg9[%c1_218, %c0_219, %c0_220] : memref<2x8x128xf32, #tpu.memory_space<vmem>>, vector<1x8x128xf32>
    %288 = vector.shape_cast %287 : vector<1x8x128xf32> to vector<8x128xf32>
    %289 = arith.truncf %279 : vector<8x128xf32> to vector<8x128xbf16>
    %c0_221 = arith.constant 0 : index
    %c0_222 = arith.constant 0 : index
    %c0_223 = arith.constant 0 : index
    %290 = vector.load %arg5[%c0_221, %c0_222, %c0_223] : memref<1x128x128xbf16, #tpu.memory_space<vmem>>, vector<1x128x128xbf16>
    %291 = vector.shape_cast %290 : vector<1x128x128xbf16> to vector<128x128xbf16>
    %cst_224 = arith.constant dense<0.000000e+00> : vector<8x128xf32>
    %292 = tpu.matmul %289, %291, %cst_224 {dimension_numbers = #tpu.dot_dimension_numbers<[1], [0], [0], [1], [0, 0, 1, 1], [], []>} : vector<8x128xbf16>, vector<128x128xbf16>, vector<8x128xf32> -> vector<8x128xf32>
    %c0_225 = arith.constant 0 : index
    %c0_226 = arith.constant 0 : index
    %c0_227 = arith.constant 0 : index
    %293 = vector.load %arg6[%c0_225, %c0_226, %c0_227] : memref<1x1x128xf32, #tpu.memory_space<vmem>>, vector<1x1x128xf32>
    %294 = vector.shape_cast %293 : vector<1x1x128xf32> to vector<1x128xf32>
    %295 = vector.broadcast %294 : vector<1x128xf32> to vector<8x128xf32>
    %296 = arith.addf %292, %295 : vector<8x128xf32>
    %297 = arith.truncf %288 : vector<8x128xf32> to vector<8x128xbf16>
    %c1_228 = arith.constant 1 : index
    %c0_229 = arith.constant 0 : index
    %c0_230 = arith.constant 0 : index
    %298 = vector.load %arg4[%c1_228, %c0_229, %c0_230] : memref<2x128x128xbf16, #tpu.memory_space<vmem>>, vector<1x128x128xbf16>
    %299 = vector.shape_cast %298 : vector<1x128x128xbf16> to vector<128x128xbf16>
    %cst_231 = arith.constant dense<0.000000e+00> : vector<8x128xf32>
    %300 = tpu.matmul %297, %299, %cst_231 {dimension_numbers = #tpu.dot_dimension_numbers<[1], [0], [0], [1], [0, 0, 1, 1], [], []>} : vector<8x128xbf16>, vector<128x128xbf16>, vector<8x128xf32> -> vector<8x128xf32>
    %301 = arith.addf %296, %300 : vector<8x128xf32>
    %302 = math.tanh %301 : vector<8x128xf32>
    %cst_232 = arith.constant 1.000000e+00 : f32
    %303 = vector.broadcast %cst_232 : f32 to vector<8x1xf32>
    %304 = arith.cmpf olt, %264, %303 : vector<8x1xf32>
    %305 = vector.shape_cast %304 : vector<8x1xi1> to vector<8x1xi1>
    %306 = vector.broadcast %305 : vector<8x1xi1> to vector<8x128xi1>
    %307 = arith.select %306, %288, %302 : vector<8x128xi1>, vector<8x128xf32>
    %c1_233 = arith.constant 1 : index
    %c0_234 = arith.constant 0 : index
    %c0_235 = arith.constant 0 : index
    %308 = vector.load %arg9[%c1_233, %c0_234, %c0_235] : memref<2x8x128xf32, #tpu.memory_space<vmem>>, vector<1x8x128xf32>
    %309 = vector.shape_cast %308 : vector<1x8x128xf32> to vector<8x128xf32>
    %310 = vector.shape_cast %307 : vector<8x128xf32> to vector<1x8x128xf32>
    tpu.vector_store %arg9[%c1_233, %c0_234, %c0_235], %310 {strides = array<i32>} : memref<2x8x128xf32, #tpu.memory_space<vmem>>, vector<1x8x128xf32>,
    %311 = arith.truncf %307 : vector<8x128xf32> to vector<8x128xbf16>
    %c5_236 = arith.constant 5 : index
    %c0_237 = arith.constant 0 : index
    %c128_238 = arith.constant 128 : index
    %312 = vector.load %arg7[%c5_236, %c0_237, %c128_238] : memref<8x8x256xbf16, #tpu.memory_space<vmem>>, vector<1x8x128xbf16>
    %313 = vector.shape_cast %312 : vector<1x8x128xbf16> to vector<8x128xbf16>
    %314 = vector.shape_cast %311 : vector<8x128xbf16> to vector<1x8x128xbf16>
    tpu.vector_store %arg7[%c5_236, %c0_237, %c128_238], %314 {strides = array<i32>} : memref<8x8x256xbf16, #tpu.memory_space<vmem>>, vector<1x8x128xbf16>,
    %c6 = arith.constant 6 : index
    %c0_239 = arith.constant 0 : index
    %c0_240 = arith.constant 0 : index
    %315 = vector.load %arg2[%c6, %c0_239, %c0_240] : memref<8x8x1xf32, #tpu.memory_space<vmem>>, vector<1x8x1xf32>
    %316 = vector.shape_cast %315 : vector<1x8x1xf32> to vector<8x1xf32>
    %c0_241 = arith.constant 0 : index
    %c0_242 = arith.constant 0 : index
    %c0_243 = arith.constant 0 : index
    %317 = vector.load %arg9[%c0_241, %c0_242, %c0_243] : memref<2x8x128xf32, #tpu.memory_space<vmem>>, vector<1x8x128xf32>
    %318 = vector.shape_cast %317 : vector<1x8x128xf32> to vector<8x128xf32>
    %c6_244 = arith.constant 6 : index
    %c0_245 = arith.constant 0 : index
    %c0_246 = arith.constant 0 : index
    %319 = vector.load %arg1[%c6_244, %c0_245, %c0_246] : memref<8x8x128xf32, #tpu.memory_space<vmem>>, vector<1x8x128xf32>
    %320 = vector.shape_cast %319 : vector<1x8x128xf32> to vector<8x128xf32>
    %321 = arith.truncf %318 : vector<8x128xf32> to vector<8x128xbf16>
    %c0_247 = arith.constant 0 : index
    %c0_248 = arith.constant 0 : index
    %c0_249 = arith.constant 0 : index
    %322 = vector.load %arg4[%c0_247, %c0_248, %c0_249] : memref<2x128x128xbf16, #tpu.memory_space<vmem>>, vector<1x128x128xbf16>
    %323 = vector.shape_cast %322 : vector<1x128x128xbf16> to vector<128x128xbf16>
    %cst_250 = arith.constant dense<0.000000e+00> : vector<8x128xf32>
    %324 = tpu.matmul %321, %323, %cst_250 {dimension_numbers = #tpu.dot_dimension_numbers<[1], [0], [0], [1], [0, 0, 1, 1], [], []>} : vector<8x128xbf16>, vector<128x128xbf16>, vector<8x128xf32> -> vector<8x128xf32>
    %325 = arith.addf %320, %324 : vector<8x128xf32>
    %326 = math.tanh %325 : vector<8x128xf32>
    %cst_251 = arith.constant 0.000000e+00 : f32
    %327 = vector.broadcast %cst_251 : f32 to vector<8x1xf32>
    %328 = arith.cmpf olt, %316, %327 : vector<8x1xf32>
    %329 = vector.shape_cast %328 : vector<8x1xi1> to vector<8x1xi1>
    %330 = vector.broadcast %329 : vector<8x1xi1> to vector<8x128xi1>
    %331 = arith.select %330, %318, %326 : vector<8x128xi1>, vector<8x128xf32>
    %c0_252 = arith.constant 0 : index
    %c0_253 = arith.constant 0 : index
    %c0_254 = arith.constant 0 : index
    %332 = vector.load %arg9[%c0_252, %c0_253, %c0_254] : memref<2x8x128xf32, #tpu.memory_space<vmem>>, vector<1x8x128xf32>
    %333 = vector.shape_cast %332 : vector<1x8x128xf32> to vector<8x128xf32>
    %334 = vector.shape_cast %331 : vector<8x128xf32> to vector<1x8x128xf32>
    tpu.vector_store %arg9[%c0_252, %c0_253, %c0_254], %334 {strides = array<i32>} : memref<2x8x128xf32, #tpu.memory_space<vmem>>, vector<1x8x128xf32>,
    %335 = arith.truncf %331 : vector<8x128xf32> to vector<8x128xbf16>
    %c6_255 = arith.constant 6 : index
    %c0_256 = arith.constant 0 : index
    %c0_257 = arith.constant 0 : index
    %336 = vector.load %arg7[%c6_255, %c0_256, %c0_257] : memref<8x8x256xbf16, #tpu.memory_space<vmem>>, vector<1x8x128xbf16>
    %337 = vector.shape_cast %336 : vector<1x8x128xbf16> to vector<8x128xbf16>
    %338 = vector.shape_cast %335 : vector<8x128xbf16> to vector<1x8x128xbf16>
    tpu.vector_store %arg7[%c6_255, %c0_256, %c0_257], %338 {strides = array<i32>} : memref<8x8x256xbf16, #tpu.memory_space<vmem>>, vector<1x8x128xbf16>,
    %c1_258 = arith.constant 1 : index
    %c0_259 = arith.constant 0 : index
    %c0_260 = arith.constant 0 : index
    %339 = vector.load %arg9[%c1_258, %c0_259, %c0_260] : memref<2x8x128xf32, #tpu.memory_space<vmem>>, vector<1x8x128xf32>
    %340 = vector.shape_cast %339 : vector<1x8x128xf32> to vector<8x128xf32>
    %341 = arith.truncf %331 : vector<8x128xf32> to vector<8x128xbf16>
    %c0_261 = arith.constant 0 : index
    %c0_262 = arith.constant 0 : index
    %c0_263 = arith.constant 0 : index
    %342 = vector.load %arg5[%c0_261, %c0_262, %c0_263] : memref<1x128x128xbf16, #tpu.memory_space<vmem>>, vector<1x128x128xbf16>
    %343 = vector.shape_cast %342 : vector<1x128x128xbf16> to vector<128x128xbf16>
    %cst_264 = arith.constant dense<0.000000e+00> : vector<8x128xf32>
    %344 = tpu.matmul %341, %343, %cst_264 {dimension_numbers = #tpu.dot_dimension_numbers<[1], [0], [0], [1], [0, 0, 1, 1], [], []>} : vector<8x128xbf16>, vector<128x128xbf16>, vector<8x128xf32> -> vector<8x128xf32>
    %c0_265 = arith.constant 0 : index
    %c0_266 = arith.constant 0 : index
    %c0_267 = arith.constant 0 : index
    %345 = vector.load %arg6[%c0_265, %c0_266, %c0_267] : memref<1x1x128xf32, #tpu.memory_space<vmem>>, vector<1x1x128xf32>
    %346 = vector.shape_cast %345 : vector<1x1x128xf32> to vector<1x128xf32>
    %347 = vector.broadcast %346 : vector<1x128xf32> to vector<8x128xf32>
    %348 = arith.addf %344, %347 : vector<8x128xf32>
    %349 = arith.truncf %340 : vector<8x128xf32> to vector<8x128xbf16>
    %c1_268 = arith.constant 1 : index
    %c0_269 = arith.constant 0 : index
    %c0_270 = arith.constant 0 : index
    %350 = vector.load %arg4[%c1_268, %c0_269, %c0_270] : memref<2x128x128xbf16, #tpu.memory_space<vmem>>, vector<1x128x128xbf16>
    %351 = vector.shape_cast %350 : vector<1x128x128xbf16> to vector<128x128xbf16>
    %cst_271 = arith.constant dense<0.000000e+00> : vector<8x128xf32>
    %352 = tpu.matmul %349, %351, %cst_271 {dimension_numbers = #tpu.dot_dimension_numbers<[1], [0], [0], [1], [0, 0, 1, 1], [], []>} : vector<8x128xbf16>, vector<128x128xbf16>, vector<8x128xf32> -> vector<8x128xf32>
    %353 = arith.addf %348, %352 : vector<8x128xf32>
    %354 = math.tanh %353 : vector<8x128xf32>
    %cst_272 = arith.constant 1.000000e+00 : f32
    %355 = vector.broadcast %cst_272 : f32 to vector<8x1xf32>
    %356 = arith.cmpf olt, %316, %355 : vector<8x1xf32>
    %357 = vector.shape_cast %356 : vector<8x1xi1> to vector<8x1xi1>
    %358 = vector.broadcast %357 : vector<8x1xi1> to vector<8x128xi1>
    %359 = arith.select %358, %340, %354 : vector<8x128xi1>, vector<8x128xf32>
    %c1_273 = arith.constant 1 : index
    %c0_274 = arith.constant 0 : index
    %c0_275 = arith.constant 0 : index
    %360 = vector.load %arg9[%c1_273, %c0_274, %c0_275] : memref<2x8x128xf32, #tpu.memory_space<vmem>>, vector<1x8x128xf32>
    %361 = vector.shape_cast %360 : vector<1x8x128xf32> to vector<8x128xf32>
    %362 = vector.shape_cast %359 : vector<8x128xf32> to vector<1x8x128xf32>
    tpu.vector_store %arg9[%c1_273, %c0_274, %c0_275], %362 {strides = array<i32>} : memref<2x8x128xf32, #tpu.memory_space<vmem>>, vector<1x8x128xf32>,
    %363 = arith.truncf %359 : vector<8x128xf32> to vector<8x128xbf16>
    %c6_276 = arith.constant 6 : index
    %c0_277 = arith.constant 0 : index
    %c128_278 = arith.constant 128 : index
    %364 = vector.load %arg7[%c6_276, %c0_277, %c128_278] : memref<8x8x256xbf16, #tpu.memory_space<vmem>>, vector<1x8x128xbf16>
    %365 = vector.shape_cast %364 : vector<1x8x128xbf16> to vector<8x128xbf16>
    %366 = vector.shape_cast %363 : vector<8x128xbf16> to vector<1x8x128xbf16>
    tpu.vector_store %arg7[%c6_276, %c0_277, %c128_278], %366 {strides = array<i32>} : memref<8x8x256xbf16, #tpu.memory_space<vmem>>, vector<1x8x128xbf16>,
    %c7 = arith.constant 7 : index
    %c0_279 = arith.constant 0 : index
    %c0_280 = arith.constant 0 : index
    %367 = vector.load %arg2[%c7, %c0_279, %c0_280] : memref<8x8x1xf32, #tpu.memory_space<vmem>>, vector<1x8x1xf32>
    %368 = vector.shape_cast %367 : vector<1x8x1xf32> to vector<8x1xf32>
    %c0_281 = arith.constant 0 : index
    %c0_282 = arith.constant 0 : index
    %c0_283 = arith.constant 0 : index
    %369 = vector.load %arg9[%c0_281, %c0_282, %c0_283] : memref<2x8x128xf32, #tpu.memory_space<vmem>>, vector<1x8x128xf32>
    %370 = vector.shape_cast %369 : vector<1x8x128xf32> to vector<8x128xf32>
    %c7_284 = arith.constant 7 : index
    %c0_285 = arith.constant 0 : index
    %c0_286 = arith.constant 0 : index
    %371 = vector.load %arg1[%c7_284, %c0_285, %c0_286] : memref<8x8x128xf32, #tpu.memory_space<vmem>>, vector<1x8x128xf32>
    %372 = vector.shape_cast %371 : vector<1x8x128xf32> to vector<8x128xf32>
    %373 = arith.truncf %370 : vector<8x128xf32> to vector<8x128xbf16>
    %c0_287 = arith.constant 0 : index
    %c0_288 = arith.constant 0 : index
    %c0_289 = arith.constant 0 : index
    %374 = vector.load %arg4[%c0_287, %c0_288, %c0_289] : memref<2x128x128xbf16, #tpu.memory_space<vmem>>, vector<1x128x128xbf16>
    %375 = vector.shape_cast %374 : vector<1x128x128xbf16> to vector<128x128xbf16>
    %cst_290 = arith.constant dense<0.000000e+00> : vector<8x128xf32>
    %376 = tpu.matmul %373, %375, %cst_290 {dimension_numbers = #tpu.dot_dimension_numbers<[1], [0], [0], [1], [0, 0, 1, 1], [], []>} : vector<8x128xbf16>, vector<128x128xbf16>, vector<8x128xf32> -> vector<8x128xf32>
    %377 = arith.addf %372, %376 : vector<8x128xf32>
    %378 = math.tanh %377 : vector<8x128xf32>
    %cst_291 = arith.constant 0.000000e+00 : f32
    %379 = vector.broadcast %cst_291 : f32 to vector<8x1xf32>
    %380 = arith.cmpf olt, %368, %379 : vector<8x1xf32>
    %381 = vector.shape_cast %380 : vector<8x1xi1> to vector<8x1xi1>
    %382 = vector.broadcast %381 : vector<8x1xi1> to vector<8x128xi1>
    %383 = arith.select %382, %370, %378 : vector<8x128xi1>, vector<8x128xf32>
    %c0_292 = arith.constant 0 : index
    %c0_293 = arith.constant 0 : index
    %c0_294 = arith.constant 0 : index
    %384 = vector.load %arg9[%c0_292, %c0_293, %c0_294] : memref<2x8x128xf32, #tpu.memory_space<vmem>>, vector<1x8x128xf32>
    %385 = vector.shape_cast %384 : vector<1x8x128xf32> to vector<8x128xf32>
    %386 = vector.shape_cast %383 : vector<8x128xf32> to vector<1x8x128xf32>
    tpu.vector_store %arg9[%c0_292, %c0_293, %c0_294], %386 {strides = array<i32>} : memref<2x8x128xf32, #tpu.memory_space<vmem>>, vector<1x8x128xf32>,
    %387 = arith.truncf %383 : vector<8x128xf32> to vector<8x128xbf16>
    %c7_295 = arith.constant 7 : index
    %c0_296 = arith.constant 0 : index
    %c0_297 = arith.constant 0 : index
    %388 = vector.load %arg7[%c7_295, %c0_296, %c0_297] : memref<8x8x256xbf16, #tpu.memory_space<vmem>>, vector<1x8x128xbf16>
    %389 = vector.shape_cast %388 : vector<1x8x128xbf16> to vector<8x128xbf16>
    %390 = vector.shape_cast %387 : vector<8x128xbf16> to vector<1x8x128xbf16>
    tpu.vector_store %arg7[%c7_295, %c0_296, %c0_297], %390 {strides = array<i32>} : memref<8x8x256xbf16, #tpu.memory_space<vmem>>, vector<1x8x128xbf16>,
    %c1_298 = arith.constant 1 : index
    %c0_299 = arith.constant 0 : index
    %c0_300 = arith.constant 0 : index
    %391 = vector.load %arg9[%c1_298, %c0_299, %c0_300] : memref<2x8x128xf32, #tpu.memory_space<vmem>>, vector<1x8x128xf32>
    %392 = vector.shape_cast %391 : vector<1x8x128xf32> to vector<8x128xf32>
    %393 = arith.truncf %383 : vector<8x128xf32> to vector<8x128xbf16>
    %c0_301 = arith.constant 0 : index
    %c0_302 = arith.constant 0 : index
    %c0_303 = arith.constant 0 : index
    %394 = vector.load %arg5[%c0_301, %c0_302, %c0_303] : memref<1x128x128xbf16, #tpu.memory_space<vmem>>, vector<1x128x128xbf16>
    %395 = vector.shape_cast %394 : vector<1x128x128xbf16> to vector<128x128xbf16>
    %cst_304 = arith.constant dense<0.000000e+00> : vector<8x128xf32>
    %396 = tpu.matmul %393, %395, %cst_304 {dimension_numbers = #tpu.dot_dimension_numbers<[1], [0], [0], [1], [0, 0, 1, 1], [], []>} : vector<8x128xbf16>, vector<128x128xbf16>, vector<8x128xf32> -> vector<8x128xf32>
    %c0_305 = arith.constant 0 : index
    %c0_306 = arith.constant 0 : index
    %c0_307 = arith.constant 0 : index
    %397 = vector.load %arg6[%c0_305, %c0_306, %c0_307] : memref<1x1x128xf32, #tpu.memory_space<vmem>>, vector<1x1x128xf32>
    %398 = vector.shape_cast %397 : vector<1x1x128xf32> to vector<1x128xf32>
    %399 = vector.broadcast %398 : vector<1x128xf32> to vector<8x128xf32>
    %400 = arith.addf %396, %399 : vector<8x128xf32>
    %401 = arith.truncf %392 : vector<8x128xf32> to vector<8x128xbf16>
    %c1_308 = arith.constant 1 : index
    %c0_309 = arith.constant 0 : index
    %c0_310 = arith.constant 0 : index
    %402 = vector.load %arg4[%c1_308, %c0_309, %c0_310] : memref<2x128x128xbf16, #tpu.memory_space<vmem>>, vector<1x128x128xbf16>
    %403 = vector.shape_cast %402 : vector<1x128x128xbf16> to vector<128x128xbf16>
    %cst_311 = arith.constant dense<0.000000e+00> : vector<8x128xf32>
    %404 = tpu.matmul %401, %403, %cst_311 {dimension_numbers = #tpu.dot_dimension_numbers<[1], [0], [0], [1], [0, 0, 1, 1], [], []>} : vector<8x128xbf16>, vector<128x128xbf16>, vector<8x128xf32> -> vector<8x128xf32>
    %405 = arith.addf %400, %404 : vector<8x128xf32>
    %406 = math.tanh %405 : vector<8x128xf32>
    %cst_312 = arith.constant 1.000000e+00 : f32
    %407 = vector.broadcast %cst_312 : f32 to vector<8x1xf32>
    %408 = arith.cmpf olt, %368, %407 : vector<8x1xf32>
    %409 = vector.shape_cast %408 : vector<8x1xi1> to vector<8x1xi1>
    %410 = vector.broadcast %409 : vector<8x1xi1> to vector<8x128xi1>
    %411 = arith.select %410, %392, %406 : vector<8x128xi1>, vector<8x128xf32>
    %c1_313 = arith.constant 1 : index
    %c0_314 = arith.constant 0 : index
    %c0_315 = arith.constant 0 : index
    %412 = vector.load %arg9[%c1_313, %c0_314, %c0_315] : memref<2x8x128xf32, #tpu.memory_space<vmem>>, vector<1x8x128xf32>
    %413 = vector.shape_cast %412 : vector<1x8x128xf32> to vector<8x128xf32>
    %414 = vector.shape_cast %411 : vector<8x128xf32> to vector<1x8x128xf32>
    tpu.vector_store %arg9[%c1_313, %c0_314, %c0_315], %414 {strides = array<i32>} : memref<2x8x128xf32, #tpu.memory_space<vmem>>, vector<1x8x128xf32>,
    %415 = arith.truncf %411 : vector<8x128xf32> to vector<8x128xbf16>
    %c7_316 = arith.constant 7 : index
    %c0_317 = arith.constant 0 : index
    %c128_318 = arith.constant 128 : index
    %416 = vector.load %arg7[%c7_316, %c0_317, %c128_318] : memref<8x8x256xbf16, #tpu.memory_space<vmem>>, vector<1x8x128xbf16>
    %417 = vector.shape_cast %416 : vector<1x8x128xbf16> to vector<8x128xbf16>
    %418 = vector.shape_cast %415 : vector<8x128xbf16> to vector<1x8x128xbf16>
    tpu.vector_store %arg7[%c7_316, %c0_317, %c128_318], %418 {strides = array<i32>} : memref<8x8x256xbf16, #tpu.memory_space<vmem>>, vector<1x8x128xbf16>,
    %c0_319 = arith.constant 0 : index
    %c0_320 = arith.constant 0 : index
    %c0_321 = arith.constant 0 : index
    %419 = vector.load %arg9[%c0_319, %c0_320, %c0_321] : memref<2x8x128xf32, #tpu.memory_space<vmem>>, vector<2x8x128xf32>
    %c0_322 = arith.constant 0 : index
    %c0_323 = arith.constant 0 : index
    %c0_324 = arith.constant 0 : index
    %420 = vector.load %arg8[%c0_322, %c0_323, %c0_324] : memref<2x8x128xf32, #tpu.memory_space<vmem>>, vector<2x8x128xf32>
    tpu.vector_store %arg8[%c0_322, %c0_323, %c0_324], %419 {strides = array<i32>} : memref<2x8x128xf32, #tpu.memory_space<vmem>>, vector<2x8x128xf32>,
    return
  }
  func.func @transform_0(%arg0: i32) -> (i32, i32, i32) {
    %c0_i32 = arith.constant 0 : i32
    %c0_i32_0 = arith.constant 0 : i32
    %c0_i32_1 = arith.constant 0 : i32
    return %arg0, %c0_i32, %c0_i32_0 : i32, i32, i32
  }
  func.func @transform_1(%arg0: i32) -> (i32, i32, i32) {
    %c0_i32 = arith.constant 0 : i32
    %c0_i32_0 = arith.constant 0 : i32
    %c0_i32_1 = arith.constant 0 : i32
    return %arg0, %c0_i32, %c0_i32_0 : i32, i32, i32
  }
  func.func @transform_2(%arg0: i32) -> (i32, i32, i32) {
    %c0_i32 = arith.constant 0 : i32
    %c0_i32_0 = arith.constant 0 : i32
    %c0_i32_1 = arith.constant 0 : i32
    %c0_i32_2 = arith.constant 0 : i32
    return %c0_i32, %c0_i32_0, %c0_i32_1 : i32, i32, i32
  }
  func.func @transform_3(%arg0: i32) -> (i32, i32, i32) {
    %c0_i32 = arith.constant 0 : i32
    %c0_i32_0 = arith.constant 0 : i32
    %c0_i32_1 = arith.constant 0 : i32
    %c0_i32_2 = arith.constant 0 : i32
    return %c0_i32, %c0_i32_0, %c0_i32_1 : i32, i32, i32
  }
  func.func @transform_4(%arg0: i32) -> (i32, i32, i32) {
    %c0_i32 = arith.constant 0 : i32
    %c0_i32_0 = arith.constant 0 : i32
    %c0_i32_1 = arith.constant 0 : i32
    %c0_i32_2 = arith.constant 0 : i32
    return %c0_i32, %c0_i32_0, %c0_i32_1 : i32, i32, i32
  }
  func.func @transform_5(%arg0: i32) -> (i32, i32, i32) {
    %c0_i32 = arith.constant 0 : i32
    %c0_i32_0 = arith.constant 0 : i32
    %c0_i32_1 = arith.constant 0 : i32
    %c0_i32_2 = arith.constant 0 : i32
    return %c0_i32, %c0_i32_0, %c0_i32_1 : i32, i32, i32
  }
  func.func @transform_6(%arg0: i32) -> (i32, i32, i32) {
    %c0_i32 = arith.constant 0 : i32
    %c0_i32_0 = arith.constant 0 : i32
    %c0_i32_1 = arith.constant 0 : i32
    return %arg0, %c0_i32, %c0_i32_0 : i32, i32, i32
  }
  func.func @transform_7(%arg0: i32) -> (i32, i32, i32) {
    %c0_i32 = arith.constant 0 : i32
    %c0_i32_0 = arith.constant 0 : i32
    %c0_i32_1 = arith.constant 0 : i32
    %c0_i32_2 = arith.constant 0 : i32
    return %c0_i32, %c0_i32_0, %c0_i32_1 : i32, i32, i32
  }
}

</mosaic_0001>

<bundles_post_ra>
// kernel: tpu_custom_call.1
= control target key start
LH: loop header
LB: loop body
LE: loop exit
PB: predicated region body
PF: predicated region fallthrough
CT: control target
= control target key end

     0   :  { %s4352_s0 = inlined_call_operand.vmem [shape: f32[16,8,128], index: 0, kind: input, shape index: {}]   ;;  %s4353_s1 = inlined_call_operand.vmem [shape: f32[16,8,1], index: 1, kind: input, shape index: {}]   ;;  %s4354_s2 = inlined_call_operand.hbm [shape: f32[2,8,128], index: 2, kind: input, shape index: {}]   ;;  %s4355_s3 = inlined_call_operand.hbm [shape: bf16[2,128,128], index: 3, kind: input, shape index: {}]   ;;  %s4356_s4 = inlined_call_operand.hbm [shape: bf16[1,128,128], index: 4, kind: input, shape index: {}]   ;;  %s4357_s5 = inlined_call_operand.vmem [shape: f32[1,1,128], index: 5, kind: input, shape index: {}]   ;;  %s4358_s6 = inlined_call_operand.hbm [shape: bf16[16,8,256], index: 6, kind: output, shape index: {0}]   ;;  %s4359_s7 = inlined_call_operand.hbm [shape: f32[2,8,128], index: 7, kind: output, shape index: {1}]  }
   0x1   :  { %4360 = sst [smem:[#allocation16_spill]] %s4354_s2 }
   0x2   :  { %4361 = sst [smem:[#allocation17_spill]] %s4355_s3 }
   0x3   :  { %13 = vsyncpa [#allocation4], 0 }
   0x4   :  { %14 = vsyncpa [#allocation7], 0 }
   0x5   :  { %15 = vsyncpa [#allocation5], 0 }
   0x6   :  { %17 = vsyncpa [#allocation5 + $0x1], 0 }
   0x7   :  { %18 = vsyncpa [#allocation11], 0  ;;  %s4040_s24 = smov 0   ;;  %s4042_s25 = smov 0  }
   0x8   :  { %s4044_s26 = smov 0   ;;  %s4046_s27 = smov 0  }
   0x9 LB: > { %s4061_s28 = sadd.s32 4294967295, %s3987_s27   ;;  %s2654_s29 = sadd.s32 4294967294, %s3987_s27   ;;  %s3987_s27 = sphi %s4046_s27, %s4371_s27   ;;  %s3983_s26 = sphi %s4044_s26, %s4370_s26   ;;  %s3979_s25 = sphi %s4042_s25, %s4369_s25   ;;  %s3975_s24 = sphi %s4040_s24, %s4368_s24  }
   0xa   : > { %s4065_s30 = sadd.s32 1, %s3987_s27   ;;  %s167_s8 = sadd.s32 1, %s3983_s26 }
   0xb   : > { %s164_s9 = ssub.s32 %s3987_s27, %s4065_s30  ;;  %p177_p0 = scmp.ne.s32.totalorder %s3983_s26, %s3979_s25 }
   0xc   : > { %p165_p1 = scmp.eq.s32.totalorder %s164_s9, 0  ;;  %p178_p2 = scmp.eq.s32.totalorder %s4061_s28, 1 }
   0xd   : > { %p183_p3 = scmp.ne.s32.totalorder %s3979_s25, %s3975_s24  ;;  %p184_p4 = scmp.eq.s32.totalorder %s2654_s29, 1 }
   0xe   : > { %s4076_s10 = scalar_select %p165_p1, %s3983_s26, %s167_s8  }
   0xf   : > { %p4080_p5 = por %p178_p2, %p177_p0  ;;  %p4084_p6 = por %p184_p4, %p183_p3 }
  0x10   : > { %p2655_p7 = scmp.ge.s32.totalorder %s3987_s27, 1  ;;  %p212_p8 = scmp.lt.s32.totalorder %s3987_s27, 3 }
  0x11   : > { %p2656_p9 = scmp.ne.s32.totalorder %s4061_s28, 0  ;;  %p3700_p10 = scmp.eq.s32.totalorder %s4061_s28, 0 }
  0x12   : > { %p4092_p11 = pnand %p2655_p7, %p212_p8  ;;  %s4365_s3 = sld [smem:[#allocation17_spill]] }
  0x13   : > { %s3989_s17 = smov [#allocation6]   ;;  %s4367_s2 = sld [smem:[#allocation16_spill]] }
  0x14   : > { %p3686_p12 = pneg %p4092_p11  ;;  %s239_s18 = sshll.u32 %s3989_s17, 4  ;;  %s240_s18 = int_to_ptr.vmem [resolvable:$true] %s239_s18 }
  0x15   : > { %s3990_s23 = smov 64   ;;  %s3991_s29 = smov 4  }
  0x16   : > { %p4103_p13 = pnand %p3700_p10, %p3686_p12  ;;  %s3992_s8 = smov [#allocation3]  }
  0x17   : > { %s225_s9 = sshll.u32 %s3992_s8, 4  ;;  %s3993_s14 = smov 128   ;;  %s226_s9 = int_to_ptr.vmem [resolvable:$true] %s225_s9 }
  0x18   : > { %s237_s16 = sshll.u32 %s4365_s3, 4  ;;  %s3994_s15 = smov 8   ;;  %s238_s16 = int_to_ptr.hbm [resolvable:$true] %s237_s16 }
  0x19   : > { %s223_s22 = sshll.u32 %s4367_s2, 4  ;;  %s251_s20 = sshll.u32 %s4356_s4, 4  ;;  %s224_s22 = int_to_ptr.hbm [resolvable:$true] %s223_s22  ;;  %s252_s20 = int_to_ptr.hbm [resolvable:$true] %s251_s20 }
  0x1a   : > { %3692 = dma.hbm_to_vmem [thread:$0]  (!%p4103_p13), %s238_s16, 2048, %s240_s18, [#allocation7], %s3990_s23, %s3990_s23, %s3991_s29  }
  0x1b   : > { %3689 = dma.hbm_to_vmem [thread:$0]  (!%p4103_p13), %s224_s22, 256, %s226_s9, [#allocation4], %s3993_s14, %s3993_s14, %s3994_s15  }
  0x1c   : > { %s3995_s21 = smov [#allocation8]   ;;  %290 = sbr.rel (%p4092_p11) target bundleno = 1366 (0x556), region = 44 }
  0x1d   : > { %s253_s2 = sshll.u32 %s3995_s21, 4  ;;  %s254_s2 = int_to_ptr.vmem [resolvable:$true] %s253_s2 }
  0x1e   : > { %3695 = dma.hbm_to_vmem [thread:$0]  (!%p4103_p13), %s252_s20, 1024, %s254_s2, [#allocation7], %s3990_s23, %s3990_s23, %s3991_s29  }
  0x21   : > { %3958 = dma.done.wait (%p3700_p10), [#allocation4], 256  }
  0x22   : > { %3960 = vsyncadd (%p3700_p10), [#allocation4], 4294967040 }
  0x23   : > { %3962 = dma.done.wait (%p3700_p10), [#allocation7], 3072  }
  0x24   : > { %3964 = vsyncadd (%p3700_p10), [#allocation7], 4294964224  ;;  %s333_s3 = sand.u32 1, %s3979_s25   ;;  %s2665_s2 = sshll.u32 %s4061_s28, 3 }
  0x25   : > { %s2664_s13 = sshll.u32 %s333_s3, 6  ;;  %p339_p0 = scmp.lt.s32.totalorder %s2665_s2, 15 }
  0x26   : > { %s4143_s9 = scalar_lea.vmem [#allocation9], %s2664_s13  ;;  %354 = sbr.rel (%p2656_p9) target bundleno = 46 (0x2e), region = 60 }
  0x27   : > { %s4373_s2 = smov (!%p339_p0, %s2665_s2), 15 }
  0x28   : > { %s2666_s16 = sshll.u32 %s4373_s2, 3 }
  0x29   : > { %s4136_s22 = scalar_lea.vmem %s4352_s0, %s2666_s16  ;;  %s4141_s8 = scalar_lea.vmem %s4353_s1, %s2666_s16 }
  0x2b   : > { %v355_v0 = vld [vmem:[#allocation3] sm:$0xff]  ;;  %v356_v1 = vld [vmem:[#allocation3 + $0x8] sm:$0xff] }
  0x2c   : > { %357 = vst [vmem:[#allocation2] sm:$0xff] %v355_v0 }
  0x2d   : > { %358 = vst [vmem:[#allocation2 + $0x8] sm:$0xff] %v356_v1 }
  0x2e PF: > { %v3481_v2 = vld [vmem:[#allocation6 + $0x38] sm:$0xff]  ;;  %v3996_v3 = vmov 0   ;;  %v4149_v4 = vld [vmem:[%s4141_s8] sm:$0xff]  ;;  %v3480_v5 = vld [vmem:[#allocation6 + $0x30] sm:$0xff]  ;;  %s3667_s17 = sshll.u32 %s4061_s28, 6  ;;  %s2520_s13 = sshll.u32 %s4143_s9, 4  ;;  %s2521_s13 = int_to_ptr.vmem [resolvable:$true] %s2520_s13 }
  0x2f   : > { %3752 = vset.pattern.permute.xlu0 %v3996_v3  ;;  %3753 = vset.pattern.permute.xlu1 %v3996_v3  ;;  %vm442_vm0 = vcmp.lt.f32.partialorder %v4149_v4, 0.0  ;;  %v4156_v7 = vld [vmem:[%s4141_s8 + $0x8] sm:$0xff]  ;;  %v3478_v10 = vld [vmem:[#allocation6 + $0x20] sm:$0xff]  ;;  %v4161_v11 = vld [vmem:[%s4141_s8 + $0x18] sm:$0xff]  ;;  %vm616_vm6 = vcmp.lt.f32.partialorder %v4149_v4, 1.0  ;;  %s2519_s2 = scalar_lea.hbm %s4358_s6, %s3667_s17  ;;  %s3997_s18 = smov [#allocation10]  }
  0x30   : > { %427 = vmatpush.bf16.msra.mxu0 %v3481_v2  ;;  %3754 = vset.pattern.permute.xlu2 %v3996_v3  ;;  %v443_v6 = vsel %vm442_vm0, 1, %v3996_v3  ;;  %v3479_v8 = vld [vmem:[#allocation6 + $0x28] sm:$0xff]  ;;  %vm711_vm1 = vcmp.lt.f32.partialorder %v4156_v7, 0.0  ;;  %v3477_v12 = vld [vmem:[#allocation6 + $0x18] sm:$0xff]  ;;  %vm1247_vm2 = vcmp.lt.f32.partialorder %v4161_v11, 0.0  ;;  %v3476_v14 = vld [vmem:[#allocation6 + $0x10] sm:$0xff] }
  0x31   : > { %445 = vperm.xlu0 %3752, %v443_v6   ;;  %v712_v9 = vsel %vm711_vm1, 1, %v3996_v3  ;;  %v1248_v13 = vsel %vm1247_vm2, 1, %v3996_v3  ;;  %v4166_v15 = vld [vmem:[%s4141_s8 + $0x28] sm:$0xff]  ;;  %v3474_v18 = vld [vmem:[#allocation6] sm:$0xff]  ;;  %v4173_v20 = vld [vmem:[%s4141_s8 + $0x30] sm:$0xff]  ;;  %v617_v51 = vsel %vm616_vm6, 1, %v3996_v3 }
  0x32   : > { %v3475_v16 = vld [vmem:[#allocation6 + $0x8] sm:$0xff]  ;;  %vm1783_vm3 = vcmp.lt.f32.partialorder %v4166_v15, 0.0  ;;  %vm2051_vm4 = vcmp.lt.f32.partialorder %v4173_v20, 0.0  ;;  %v4180_v23 = vld [vmem:[%s4141_s8 + $0x38] sm:$0xff]  ;;  %v3496_v27 = vld [vmem:[#allocation6 + $0x70] sm:$0xff]  ;;  %619 = vperm.xlu1 %3753, %v617_v51   ;;  %vm884_vm7 = vcmp.lt.f32.partialorder %v4156_v7, 1.0 }
  0x33   : > { %v1784_v17 = vsel %vm1783_vm3, 1, %v3996_v3  ;;  %v4170_v19 = vld [vmem:[#allocation2] sm:$0xff]  ;;  %v2052_v22 = vsel %vm2051_vm4, 1, %v3996_v3  ;;  %vm2492_vm5 = vcmp.lt.f32.partialorder %v4180_v23, 1.0  ;;  %v3497_v25 = vld [vmem:[#allocation6 + $0x78] sm:$0xff]  ;;  %v3488_v28 = vld [vmem:[#allocation8 + $0x30] sm:$0xff] }
  0x34   : > { %428 = vmatpush.bf16.msra.mxu0 %v3480_v5  ;;  %v362_v21 = vpack.c.bf16 %v4170_v19, %v4170_v19  ;;  %v2493_v24 = vsel %vm2492_vm5, 1, %v3996_v3  ;;  %v3489_v26 = vld [vmem:[#allocation8 + $0x38] sm:$0xff]  ;;  %601 = vmatpush.bf16.msra.mxu2 %v3497_v25  ;;  %v3495_v29 = vld [vmem:[#allocation6 + $0x68] sm:$0xff]  ;;  %v3494_v32 = vld [vmem:[#allocation6 + $0x60] sm:$0xff]  ;;  %v885_v55 = vsel %vm884_vm7, 1, %v3996_v3  ;;  %vm2224_vm11 = vcmp.lt.f32.partialorder %v4173_v20, 1.0 }
  0x35   : > { %522 = vmatpush.bf16.msra.mxu1 %v3489_v26  ;;  %v3505_v30 = vld [vmem:[#allocation6 + $0x38] sm:$0xff]  ;;  %v3487_v31 = vld [vmem:[#allocation8 + $0x28] sm:$0xff]  ;;  %v3504_v33 = vld [vmem:[#allocation6 + $0x30] sm:$0xff]  ;;  %v2225_v4 = vsel %vm2224_vm11, 1, %v3996_v3  ;;  %vm1420_vm14 = vcmp.lt.f32.partialorder %v4161_v11, 1.0  ;;  %vm1956_vm15 = vcmp.lt.f32.partialorder %v4166_v15, 1.0 }
  0x36   : > { %696 = vmatpush.bf16.msra.mxu3 %v3505_v30  ;;  %v3486_v34 = vld [vmem:[#allocation8 + $0x20] sm:$0xff]  ;;  %v3493_v35 = vld [vmem:[#allocation6 + $0x58] sm:$0xff]  ;;  %v3503_v36 = vld [vmem:[#allocation6 + $0x28] sm:$0xff]  ;;  %v1957_v11 = vsel %vm1956_vm15, 1, %v3996_v3  ;;  %vm2319_vm2 = vcmp.lt.f32.partialorder %v4180_v23, 0.0  ;;  %s2522_s16 = sshll.u32 %s2519_s2, 4  ;;  %s2523_s16 = int_to_ptr.hbm [resolvable:$true] %s2522_s16 }
  0x37   : > { %v3485_v37 = vld [vmem:[#allocation8 + $0x18] sm:$0xff]  ;;  %v3492_v38 = vld [vmem:[#allocation6 + $0x50] sm:$0xff]  ;;  %v3502_v39 = vld [vmem:[#allocation6 + $0x20] sm:$0xff]  ;;  %s4310_s19 = sshll.u32 %s3997_s18, 4  ;;  %s2507_s14 = scalar_lea.sflag [#allocation5], %s333_s3  ;;  %s2535_s19 = int_to_ptr.vmem [resolvable:$true] %s4310_s19 }
  0x38   : > { %429 = vmatpush.bf16.msra.mxu0 %v3479_v8  ;;  %602 = vmatpush.bf16.msra.mxu2 %v3496_v27  ;;  %v3501_v40 = vld [vmem:[#allocation6 + $0x18] sm:$0xff]  ;;  %v3484_v41 = vld [vmem:[#allocation8 + $0x10] sm:$0xff]  ;;  %v3491_v42 = vld [vmem:[#allocation6 + $0x48] sm:$0xff]  ;;  %s3905_s21 = scalar_lea.hbm %s4358_s6, 128 }
  0x39   : > { %714 = vperm.xlu0 %3752, %v712_v9   ;;  %523 = vmatpush.bf16.msra.mxu1 %v3488_v28  ;;  %v3500_v43 = vld [vmem:[#allocation6 + $0x10] sm:$0xff]  ;;  %v3483_v44 = vld [vmem:[#allocation8 + $0x8] sm:$0xff]  ;;  %v3490_v45 = vld [vmem:[#allocation6 + $0x40] sm:$0xff] }
  0x3a   : > { %697 = vmatpush.bf16.msra.mxu3 %v3504_v33  ;;  %v3499_v46 = vld [vmem:[#allocation6 + $0x8] sm:$0xff]  ;;  %v3482_v49 = vld [vmem:[#allocation8] sm:$0xff]  ;;  %v3521_v52 = vld [vmem:[#allocation6 + $0x78] sm:$0xff]  ;;  %887 = vperm.xlu1 %3753, %v885_v55  }
  0x3b   : > { %v4184_v47 = vld [vmem:[#allocation2 + $0x8] sm:$0xff]  ;;  %v3498_v50 = vld [vmem:[#allocation6] sm:$0xff]  ;;  %v3513_v53 = vld [vmem:[#allocation8 + $0x38] sm:$0xff] }
  0x3c   : > { %430 = vmatpush.bf16.msra.mxu0 %v3478_v10  ;;  %603 = vmatpush.bf16.msra.mxu2 %v3495_v29  ;;  %v535_v48 = vpack.c.bf16 %v4184_v47, %v4184_v47  ;;  %v3520_v54 = vld [vmem:[#allocation6 + $0x70] sm:$0xff]  ;;  %v3066_v56 = vld [vmem:[%s4141_s8 + $0x20] sm:$0xff]  ;;  %v3529_v5 = vld [vmem:[#allocation6 + $0x38] sm:$0xff] }
  0x3d   : > { %524 = vmatpush.bf16.msra.mxu1 %v3487_v31  ;;  %vm1515_vm8 = vcmp.lt.f32.partialorder %v3066_v56, 0.0  ;;  %v361_v58 = vld [vmem:[%s4136_s22] sm:$0xff]  ;;  %vm1688_vm9 = vcmp.lt.f32.partialorder %v3066_v56, 1.0  ;;  %v3512_v6 = vld [vmem:[#allocation8 + $0x30] sm:$0xff]  ;;  %v3519_v7 = vld [vmem:[#allocation6 + $0x68] sm:$0xff] }
  0x3e   : > { %698 = vmatpush.bf16.msra.mxu3 %v3503_v36  ;;  %v1516_v57 = vsel %vm1515_vm8, 1, %v3996_v3  ;;  %v1689_v61 = vsel %vm1688_vm9, 1, %v3996_v3  ;;  %v3528_v8 = vld [vmem:[#allocation6 + $0x30] sm:$0xff]  ;;  %v3511_v9 = vld [vmem:[#allocation8 + $0x28] sm:$0xff]  ;;  %v3518_v10 = vld [vmem:[#allocation6 + $0x60] sm:$0xff] }
  0x3f   : > { %v3525_v20 = vld [vmem:[#allocation6 + $0x18] sm:$0xff]  ;;  %v3507_v26 = vld [vmem:[#allocation8 + $0x8] sm:$0xff]  ;;  %v3514_v27 = vld [vmem:[#allocation6 + $0x40] sm:$0xff] }
  0x40   : > { %431 = vmatpush.bf16.msra.mxu0 %v3477_v12  ;;  %604 = vmatpush.bf16.msra.mxu2 %v3494_v32  ;;  %v3527_v12 = vld [vmem:[#allocation6 + $0x28] sm:$0xff]  ;;  %v3506_v29 = vld [vmem:[#allocation8] sm:$0xff]  ;;  %v2866_v31 = vld [vmem:[%s4141_s8 + $0x10] sm:$0xff]  ;;  %s2536_s8 = sshll.u32 %s4359_s7, 4  ;;  %s2537_s8 = int_to_ptr.hbm [resolvable:$true] %s2536_s8 }
  0x41   : > { %1250 = vperm.xlu0 %3752, %v1248_v13   ;;  %525 = vmatpush.bf16.msra.mxu1 %v3486_v34  ;;  %v3510_v13 = vld [vmem:[#allocation8 + $0x20] sm:$0xff]  ;;  %v3523_v28 = vld [vmem:[#allocation6 + $0x8] sm:$0xff]  ;;  %vm979_vm12 = vcmp.lt.f32.partialorder %v2866_v31, 0.0  ;;  %vm1152_vm13 = vcmp.lt.f32.partialorder %v2866_v31, 1.0  ;;  %v3553_v55 = vld [vmem:[#allocation6 + $0x38] sm:$0xff] }
  0x42   : > { %699 = vmatpush.bf16.msra.mxu3 %v3502_v39  ;;  %1518 = vperm.xlu1 %3753, %v1516_v57   ;;  %v3522_v30 = vld [vmem:[#allocation6] sm:$0xff]  ;;  %v980_v32 = vsel %vm979_vm12, 1, %v3996_v3  ;;  %v1153_v33 = vsel %vm1152_vm13, 1, %v3996_v3  ;;  %v2767_v39 = vld [vmem:[%s4136_s22 + $0x8] sm:$0xff]  ;;  %v3536_v56 = vld [vmem:[#allocation8 + $0x30] sm:$0xff] }
  0x43   : > { %982 = vperm.xlu2 %3754, %v980_v32   ;;  %v3755_v34 = vld [vmem:[%s4357_s5] ss:$0 sm:$0xff]  ;;  %v3543_v57 = vld [vmem:[#allocation6 + $0x68] sm:$0xff]  ;;  %v3552_v23 = vld [vmem:[#allocation6 + $0x30] sm:$0xff] }
  0x44   : > { %432 = vmatpush.bf16.msra.mxu0 %v3476_v14  ;;  %605 = vmatpush.bf16.msra.mxu2 %v3493_v35  ;;  %v3517_v14 = vld [vmem:[#allocation6 + $0x58] sm:$0xff] }
  0x45   : > { %526 = vmatpush.bf16.msra.mxu1 %v3485_v37 }
  0x46   : > { %700 = vmatpush.bf16.msra.mxu3 %v3501_v40 }
  0x48   : > { %433 = vmatpush.bf16.msra.mxu0 %v3475_v16  ;;  %606 = vmatpush.bf16.msra.mxu2 %v3492_v38  ;;  %v3526_v16 = vld [vmem:[#allocation6 + $0x20] sm:$0xff]  ;;  %v1421_v38 = vsel %vm1420_vm14, 1, %v3996_v3 }
  0x49   : > { %1786 = vperm.xlu0 %3752, %v1784_v17   ;;  %527 = vmatpush.bf16.msra.mxu1 %v3484_v41 }
  0x4a   : > { %701 = vmatpush.bf16.msra.mxu3 %v3500_v43  ;;  %1691 = vperm.xlu1 %3753, %v1689_v61   ;;  %v3541_v61 = vld [vmem:[#allocation6 + $0x58] sm:$0xff] }
  0x4b   : > { %1155 = vperm.xlu2 %3754, %v1153_v33  }
  0x4c   : > { %434 = vmatpush.bf16.msra.mxu0 %v3474_v18  ;;  %607 = vmatpush.bf16.msra.mxu2 %v3491_v42  ;;  %v3509_v18 = vld [vmem:[#allocation8 + $0x18] sm:$0xff] }
  0x4d   : > { %528 = vmatpush.bf16.msra.mxu1 %v3483_v44 }
  0x4e   : > { %702 = vmatpush.bf16.msra.mxu3 %v3499_v46 }
  0x4f   : > { %435 = vmatmul.bf16.vlgmr.msra.gmra.mxu0 %v362_v21  ;;  %v3508_v21 = vld [vmem:[#allocation8 + $0x10] sm:$0xff] }
  0x50   : > { %608 = vmatpush.bf16.msra.mxu2 %v3490_v45  ;;  %791 = vmatpush.bf16.msrb.mxu0 %v3513_v53  ;;  %v3537_v53 = vld [vmem:[#allocation8 + $0x38] sm:$0xff] }
  0x51   : > { %2054 = vperm.xlu0 %3752, %v2052_v22   ;;  %529 = vmatpush.bf16.msra.mxu1 %v3482_v49  ;;  %v3515_v22 = vld [vmem:[#allocation6 + $0x48] sm:$0xff] }
  0x52   : > { %703 = vmatpush.bf16.msra.mxu3 %v3498_v50  ;;  %2227 = vperm.xlu1 %3753, %v2225_v4   ;;  %v3539_v4 = vld [vmem:[#allocation6 + $0x48] sm:$0xff] }
  0x53   : > { %609 = vmatmul.bf16.vlgmr.msra.gmra.mxu2 %v535_v48  ;;  %1423 = vperm.xlu2 %3754, %v1421_v38   ;;  %v3569_v38 = vld [vmem:[#allocation6 + $0x78] sm:$0xff] }
  0x54   : > { %964 = vmatpush.bf16.msrb.mxu2 %v3529_v5  ;;  %792 = vmatpush.bf16.msrb.mxu0 %v3512_v6  ;;  %v3548_v5 = vld [vmem:[#allocation6 + $0x10] sm:$0xff]  ;;  %v3531_v6 = vld [vmem:[#allocation8 + $0x8] sm:$0xff] }
  0x55   : > { %869 = vmatpush.bf16.msrb.mxu1 %v3521_v52  ;;  %v3545_v52 = vld [vmem:[#allocation6 + $0x78] sm:$0xff] }
  0x56   : > { %1059 = vmatpush.bf16.msrb.mxu3 %v3537_v53  ;;  %v3563_v53 = vld [vmem:[#allocation6 + $0x48] sm:$0xff] }
  0x58   : > { %965 = vmatpush.bf16.msrb.mxu2 %v3528_v8  ;;  %793 = vmatpush.bf16.msrb.mxu0 %v3511_v9  ;;  %v3547_v8 = vld [vmem:[#allocation6 + $0x8] sm:$0xff]  ;;  %v3530_v9 = vld [vmem:[#allocation8] sm:$0xff] }
  0x59   : > { %2495 = vperm.xlu0 %3752, %v2493_v24   ;;  %870 = vmatpush.bf16.msrb.mxu1 %v3520_v54  ;;  %v3524_v24 = vld [vmem:[#allocation6 + $0x10] sm:$0xff] }
  0x5a   : > { %v3544_v54 = vld [vmem:[#allocation6 + $0x70] sm:$0xff]  ;;  %1060 = vmatpush.bf16.msrb.mxu3 %v3536_v56  ;;  %v3601_v56 = vld [vmem:[#allocation6 + $0x38] sm:$0xff] }
  0x5b   : > { %1959 = vperm.xlu2 %3754, %v1957_v11   ;;  %v3573_v11 = vld [vmem:[#allocation6 + $0x18] sm:$0xff] }
  0x5c   : > { %966 = vmatpush.bf16.msrb.mxu2 %v3527_v12  ;;  %794 = vmatpush.bf16.msrb.mxu0 %v3510_v13  ;;  %v3561_v12 = vld [vmem:[#allocation8 + $0x38] sm:$0xff]  ;;  %v3560_v13 = vld [vmem:[#allocation8 + $0x30] sm:$0xff] }
  0x5d   : > { %871 = vmatpush.bf16.msrb.mxu1 %v3519_v7  ;;  %v3538_v7 = vld [vmem:[#allocation6 + $0x40] sm:$0xff] }
  0x60   : > { %967 = vmatpush.bf16.msrb.mxu2 %v3526_v16  ;;  %795 = vmatpush.bf16.msrb.mxu0 %v3509_v18  ;;  %v3756_v16 = vld [vmem:[%s4357_s5] ss:$0 sm:$0xff] }
  0x61   : > { %872 = vmatpush.bf16.msrb.mxu1 %v3518_v10  ;;  %v3546_v10 = vld [vmem:[#allocation6] sm:$0xff] }
  0x64   : > { %968 = vmatpush.bf16.msrb.mxu2 %v3525_v20  ;;  %796 = vmatpush.bf16.msrb.mxu0 %v3508_v21  ;;  %v2867_v21 = vld [vmem:[%s4136_s22 + $0x10] sm:$0xff] }
  0x65   : > { %873 = vmatpush.bf16.msrb.mxu1 %v3517_v14 }
  0x68   : > { %969 = vmatpush.bf16.msrb.mxu2 %v3524_v24  ;;  %797 = vmatpush.bf16.msrb.mxu0 %v3507_v26 }
  0x6c   : > { %970 = vmatpush.bf16.msrb.mxu2 %v3523_v28  ;;  %798 = vmatpush.bf16.msrb.mxu0 %v3506_v29 }
  0x70   : > { %971 = vmatpush.bf16.msrb.mxu2 %v3522_v30  ;;  %1137 = vmatpush.bf16.msra.mxu0 %v3545_v52  ;;  %v3570_v52 = vld [vmem:[#allocation6] sm:$0xff] }
  0x74   : > { %1138 = vmatpush.bf16.msra.mxu0 %v3544_v54  ;;  %1327 = vmatpush.bf16.msra.mxu2 %v3561_v12  ;;  %v3562_v54 = vld [vmem:[#allocation6 + $0x40] sm:$0xff] }
  0x78   : > { %1139 = vmatpush.bf16.msra.mxu0 %v3543_v57  ;;  %1328 = vmatpush.bf16.msra.mxu2 %v3560_v13  ;;  %v3584_v57 = vld [vmem:[#allocation8 + $0x30] sm:$0xff] }
  0x9d   : > { %v983_v28 = vpop.permute.xlu2 %982 }
  0x9e   : > { %vm984_vm4 = vcmp.eq.s32.totalorder %v983_v28, 1  ;;  %v3595_v28 = vld [vmem:[#allocation6 + $0x8] sm:$0xff] }
  0xa3   : > { %v446_v62 = vpop.permute.xlu0 %445 }
  0xa4   : > { %vm447_vm10 = vcmp.eq.s32.totalorder %v446_v62, 1  ;;  %v620_v42 = vpop.permute.xlu1 %619  ;;  %v3550_v62 = vld [vmem:[#allocation6 + $0x20] sm:$0xff] }
  0xa5   : > { %vm621_vm0 = vcmp.eq.s32.totalorder %v620_v42, 1  ;;  %v3574_v42 = vld [vmem:[#allocation6 + $0x20] sm:$0xff]  ;;  %v1156_v13 = vpop.permute.xlu2 %1155 }
  0xa6   : > { %vm1157_vm6 = vcmp.eq.s32.totalorder %v1156_v13, 1 }
  0xab   : > { %v715_v48 = vpop.permute.xlu0 %714 }
  0xac   : > { %vm716_vm1 = vcmp.eq.s32.totalorder %v715_v48, 1  ;;  %v888_v26 = vpop.permute.xlu1 %887  ;;  %v3572_v48 = vld [vmem:[#allocation6 + $0x10] sm:$0xff] }
  0xad   : > { %vm889_vm3 = vcmp.eq.s32.totalorder %v888_v26, 1  ;;  %v3591_v26 = vld [vmem:[#allocation6 + $0x68] sm:$0xff] }
  0xcc   : > { %v436_v59 = vpop.f32.mrf.mxu0 }
  0xcd   : > { %v440_v60 = vadd.f32 %v436_v59, %v361_v58  ;;  %v3535_v58 = vld [vmem:[#allocation8 + $0x28] sm:$0xff]  ;;  %v3542_v59 = vld [vmem:[#allocation6 + $0x60] sm:$0xff] }
  0xce   : > { %1061 = vmatpush.bf16.msrb.mxu3 %v3535_v58  ;;  %1140 = vmatpush.bf16.msra.mxu0 %v3542_v59  ;;  %v3600_v58 = vld [vmem:[#allocation6 + $0x30] sm:$0xff]  ;;  %v3583_v59 = vld [vmem:[#allocation8 + $0x28] sm:$0xff] }
  0xcf   : > { %3763 = vtanh.f32 %v440_v60  ;;  %v3551_v60 = vld [vmem:[#allocation6 + $0x28] sm:$0xff] }
  0xd2   : > { %1141 = vmatpush.bf16.msra.mxu0 %v3541_v61  ;;  %v3582_v61 = vld [vmem:[#allocation8 + $0x20] sm:$0xff] }
  0xd4   : > { %v438_v63 = vpop.f32.mrf.mxu0 }
  0xd5   : > { %v3764_v0 = vpop.eup %3763  ;;  %v3533_v63 = vld [vmem:[#allocation8 + $0x18] sm:$0xff] }
  0xd6   : > { %v4198_v1 = vsel %vm447_vm10, %v4170_v19, %v3764_v0  ;;  %v610_v17 = vpop.f32.mrf.mxu2  ;;  %v3516_v19 = vld [vmem:[#allocation6 + $0x50] sm:$0xff] }
  0xd7   : > { %v450_v2 = vpack.c.bf16 %v4198_v1, %v4198_v1  ;;  %874 = vmatpush.bf16.msrb.mxu1 %v3516_v19  ;;  %v3540_v0 = vld [vmem:[#allocation6 + $0x50] sm:$0xff] }
  0xd8   : > { %1142 = vmatpush.bf16.msra.mxu0 %v3540_v0  ;;  %v3757_v0 = vld [vmem:[%s4357_s5] ss:$0 sm:$0xff] }
  0xd9   : > { %451 = vst [vmem:[%s4143_s9] sm:$0xf] %v450_v2  ;;  %530 = vmatmul.bf16.vlgmr.msra.gmra.mxu1 %v450_v2  ;;  %704 = vmatmul.bf16.vlgmr.msra.gmra.mxu3 %v450_v2  ;;  %v3532_v2 = vld [vmem:[#allocation8 + $0x10] sm:$0xff] }
  0xdb   : > { %875 = vmatpush.bf16.msrb.mxu1 %v3515_v22 }
  0xdc   : > { %1143 = vmatpush.bf16.msra.mxu0 %v3539_v4 }
  0xde   : > { %v612_v25 = vpop.f32.mrf.mxu2 }
  0xdf   : > { %876 = vmatpush.bf16.msrb.mxu1 %v3514_v27 }
  0xe0   : > { %1144 = vmatpush.bf16.msra.mxu0 %v3538_v7 }
  0xe3   : > { %1232 = vmatpush.bf16.msra.mxu1 %v3553_v55  ;;  %v3585_v55 = vld [vmem:[#allocation8 + $0x38] sm:$0xff] }
  0xe7   : > { %1233 = vmatpush.bf16.msra.mxu1 %v3552_v23  ;;  %v3593_v23 = vld [vmem:[#allocation6 + $0x78] sm:$0xff] }
  0xeb   : > { %1234 = vmatpush.bf16.msra.mxu1 %v3551_v60 }
  0xef   : > { %1235 = vmatpush.bf16.msra.mxu1 %v3550_v62 }
 0x156   : > { %v531_v35 = vpop.f32.mrf.mxu1 }
 0x157   : > { %v532_v36 = vadd.f32 %v3755_v34, %v531_v35  ;;  %v3577_v35 = vld [vmem:[#allocation6 + $0x38] sm:$0xff] }
 0x159   : > { %v614_v37 = vadd.f32 %v610_v17, %v532_v36  ;;  %v3576_v36 = vld [vmem:[#allocation6 + $0x30] sm:$0xff] }
 0x15b   : > { %3765 = vtanh.f32 %v614_v37  ;;  %v3559_v37 = vld [vmem:[#allocation8 + $0x28] sm:$0xff] }
 0x15c   : > { %v705_v40 = vpop.f32.mrf.mxu3  ;;  %1329 = vmatpush.bf16.msra.mxu2 %v3559_v37  ;;  %v3067_v37 = vld [vmem:[%s4136_s22 + $0x20] sm:$0xff] }
 0x15d   : > { %v709_v41 = vadd.f32 %v2767_v39, %v705_v40  ;;  %v3575_v39 = vld [vmem:[#allocation6 + $0x28] sm:$0xff]  ;;  %v3558_v40 = vld [vmem:[#allocation8 + $0x20] sm:$0xff] }
 0x15e   : > { %v533_v43 = vpop.f32.mrf.mxu1 }
 0x15f   : > { %3767 = vtanh.f32 %v709_v41  ;;  %v3568_v41 = vld [vmem:[#allocation6 + $0x70] sm:$0xff]  ;;  %v3557_v43 = vld [vmem:[#allocation8 + $0x18] sm:$0xff] }
 0x160   : > { %1330 = vmatpush.bf16.msra.mxu2 %v3558_v40 }
 0x161   : > { %v3766_v44 = vpop.eup %3765 }
 0x162   : > { %v4216_v45 = vsel %vm621_vm0, %v4184_v47, %v3766_v44  ;;  %v2320_v47 = vsel %vm2319_vm2, 1, %v3996_v3  ;;  %v3534_v3 = vld [vmem:[#allocation8 + $0x20] sm:$0xff]  ;;  %v3567_v44 = vld [vmem:[#allocation6 + $0x68] sm:$0xff] }
 0x163   : > { %v624_v46 = vpack.c.bf16 %v4216_v45, %v4216_v45  ;;  %2322 = vperm.xlu2 %3754, %v2320_v47   ;;  %1062 = vmatpush.bf16.msrb.mxu3 %v3534_v3  ;;  %v3564_v47 = vld [vmem:[#allocation6 + $0x50] sm:$0xff]  ;;  %v2967_v3 = vld [vmem:[%s4136_s22 + $0x18] sm:$0xff] }
 0x164   : > { %v707_v49 = vpop.f32.mrf.mxu3  ;;  %1331 = vmatpush.bf16.msra.mxu2 %v3557_v43 }
 0x165   : > { %v3768_v50 = vpop.eup %3767  ;;  %625 = vst [vmem:[%s4143_s9 + $0x4] sm:$0xf] %v624_v46  ;;  %877 = vmatmul.bf16.vlgmr.msrb.gmra.mxu1 %v624_v46  ;;  %v3566_v46 = vld [vmem:[#allocation6 + $0x60] sm:$0xff]  ;;  %v3555_v49 = vld [vmem:[#allocation8 + $0x8] sm:$0xff] }
 0x166   : > { %v4222_v15 = vsel %vm716_vm1, %v4198_v1, %v3768_v50  ;;  %v3549_v1 = vld [vmem:[#allocation6 + $0x18] sm:$0xff] }
 0x167   : > { %v719_v51 = vpack.c.bf16 %v4222_v15, %v4222_v15  ;;  %1063 = vmatpush.bf16.msrb.mxu3 %v3533_v63  ;;  %1236 = vmatpush.bf16.msra.mxu1 %v3549_v1  ;;  %v3565_v50 = vld [vmem:[#allocation6 + $0x58] sm:$0xff] }
 0x169   : > { %2800 = vst [vmem:[%s4143_s9 + $0x8] sm:$0xf] %v719_v51  ;;  %799 = vmatmul.bf16.vlgmr.msrb.gmra.mxu0 %v719_v51  ;;  %972 = vmatmul.bf16.vlgmr.msrb.gmra.mxu2 %v719_v51  ;;  %v3554_v51 = vld [vmem:[#allocation8] sm:$0xff] }
 0x16a   : > { %1500 = vmatpush.bf16.msrb.mxu0 %v3577_v35  ;;  %v3586_v35 = vld [vmem:[#allocation6 + $0x40] sm:$0xff] }
 0x16b   : > { %1064 = vmatpush.bf16.msrb.mxu3 %v3532_v2  ;;  %1237 = vmatpush.bf16.msra.mxu1 %v3548_v5  ;;  %v1251_v5 = vpop.permute.xlu0 %1250 }
 0x16c   : > { %vm1252_vm5 = vcmp.eq.s32.totalorder %v1251_v5, 1  ;;  %v3614_v5 = vld [vmem:[#allocation6 + $0x60] sm:$0xff] }
 0x16e   : > { %1501 = vmatpush.bf16.msrb.mxu0 %v3576_v36  ;;  %v3609_v36 = vld [vmem:[#allocation8 + $0x38] sm:$0xff] }
 0x16f   : > { %1065 = vmatpush.bf16.msrb.mxu3 %v3531_v6  ;;  %1238 = vmatpush.bf16.msra.mxu1 %v3547_v8 }
 0x172   : > { %1502 = vmatpush.bf16.msrb.mxu0 %v3575_v39 }
 0x173   : > { %1066 = vmatpush.bf16.msrb.mxu3 %v3530_v9  ;;  %1239 = vmatpush.bf16.msra.mxu1 %v3546_v10 }
 0x176   : > { %1503 = vmatpush.bf16.msrb.mxu0 %v3574_v42 }
 0x177   : > { %1405 = vmatpush.bf16.msra.mxu3 %v3569_v38  ;;  %1595 = vmatpush.bf16.msrb.mxu1 %v3585_v55  ;;  %v3608_v55 = vld [vmem:[#allocation8 + $0x30] sm:$0xff] }
 0x17a   : > { %1504 = vmatpush.bf16.msrb.mxu0 %v3573_v11 }
 0x17b   : > { %1406 = vmatpush.bf16.msra.mxu3 %v3568_v41  ;;  %1596 = vmatpush.bf16.msrb.mxu1 %v3584_v57  ;;  %v1519_v41 = vpop.permute.xlu1 %1518  ;;  %v3607_v57 = vld [vmem:[#allocation8 + $0x28] sm:$0xff] }
 0x17c   : > { %vm1520_vm7 = vcmp.eq.s32.totalorder %v1519_v41, 1  ;;  %v3630_v41 = vld [vmem:[#allocation8 + $0x20] sm:$0xff] }
 0x17e   : > { %1505 = vmatpush.bf16.msrb.mxu0 %v3572_v48 }
 0x17f   : > { %1407 = vmatpush.bf16.msra.mxu3 %v3567_v44  ;;  %1597 = vmatpush.bf16.msrb.mxu1 %v3583_v59  ;;  %v3758_v44 = vld [vmem:[%s4357_s5] ss:$0 sm:$0xff] }
 0x180   : > { %v3622_v59 = vld [vmem:[#allocation6 + $0x20] sm:$0xff] }
 0x183   : > { %1408 = vmatpush.bf16.msra.mxu3 %v3566_v46  ;;  %1598 = vmatpush.bf16.msrb.mxu1 %v3582_v61  ;;  %v3621_v61 = vld [vmem:[#allocation6 + $0x18] sm:$0xff] }
 0x187   : > { %1409 = vmatpush.bf16.msra.mxu3 %v3565_v50 }
 0x18b   : > { %1410 = vmatpush.bf16.msra.mxu3 %v3564_v47 }
 0x18f   : > { %1411 = vmatpush.bf16.msra.mxu3 %v3563_v53 }
 0x193   : > { %1412 = vmatpush.bf16.msra.mxu3 %v3562_v54  ;;  %v3625_v54 = vld [vmem:[#allocation6 + $0x38] sm:$0xff] }
 0x1e2   : > { %v878_v14 = vpop.f32.mrf.mxu1 }
 0x1e6   : > { %v800_v17 = vpop.f32.mrf.mxu0 }
 0x1e7   : > { %v801_v18 = vadd.f32 %v3756_v16, %v800_v17 }
 0x1e9   : > { %v882_v19 = vadd.f32 %v878_v14, %v801_v18  ;;  %v3599_v18 = vld [vmem:[#allocation6 + $0x28] sm:$0xff] }
 0x1ea   : > { %v880_v20 = vpop.f32.mrf.mxu1 }
 0x1eb   : > { %3769 = vtanh.f32 %v882_v19  ;;  %v3598_v19 = vld [vmem:[#allocation6 + $0x20] sm:$0xff]  ;;  %v3581_v20 = vld [vmem:[#allocation8 + $0x18] sm:$0xff] }
 0x1ec   : > { %v973_v22 = vpop.f32.mrf.mxu2  ;;  %1599 = vmatpush.bf16.msrb.mxu1 %v3581_v20  ;;  %v1787_v20 = vpop.permute.xlu0 %1786 }
 0x1ed   : > { %v977_v24 = vadd.f32 %v2867_v21, %v973_v22  ;;  %v3597_v21 = vld [vmem:[#allocation6 + $0x18] sm:$0xff]  ;;  %v3592_v22 = vld [vmem:[#allocation6 + $0x70] sm:$0xff]  ;;  %vm1788_vm9 = vcmp.eq.s32.totalorder %v1787_v20, 1 }
 0x1ee   : > { %v802_v25 = vpop.f32.mrf.mxu0  ;;  %v3652_v20 = vld [vmem:[#allocation8 + $0x10] sm:$0xff] }
 0x1ef   : > { %3771 = vtanh.f32 %v977_v24  ;;  %v3580_v24 = vld [vmem:[#allocation8 + $0x10] sm:$0xff] }
 0x1f0   : > { %v3596_v25 = vld [vmem:[#allocation6 + $0x10] sm:$0xff]  ;;  %1600 = vmatpush.bf16.msrb.mxu1 %v3580_v24  ;;  %v3759_v24 = vld [vmem:[%s4357_s5] ss:$0 sm:$0xff] }
 0x1f1   : > { %v3770_v27 = vpop.eup %3769 }
 0x1f2   : > { %v4234_v29 = vsel %vm889_vm3, %v4216_v45, %v3770_v27  ;;  %v3556_v45 = vld [vmem:[#allocation8 + $0x10] sm:$0xff]  ;;  %v3579_v27 = vld [vmem:[#allocation8 + $0x8] sm:$0xff] }
 0x1f3   : > { %v892_v30 = vpack.c.bf16 %v4234_v29, %v4234_v29  ;;  %1332 = vmatpush.bf16.msra.mxu2 %v3556_v45 }
 0x1f4   : > { %v975_v31 = vpop.f32.mrf.mxu2  ;;  %1601 = vmatpush.bf16.msrb.mxu1 %v3579_v27 }
 0x1f5   : > { %v3772_v32 = vpop.eup %3771  ;;  %2865 = vst [vmem:[%s4143_s9 + $0xc] sm:$0xf] %v892_v30  ;;  %1145 = vmatmul.bf16.vlgmr.msra.gmra.mxu0 %v892_v30  ;;  %v3578_v30 = vld [vmem:[#allocation8] sm:$0xff] }
 0x1f6   : > { %v4240_v33 = vsel %vm984_vm4, %v4222_v15, %v3772_v32  ;;  %v3571_v15 = vld [vmem:[#allocation6 + $0x8] sm:$0xff]  ;;  %v3594_v31 = vld [vmem:[#allocation6] sm:$0xff]  ;;  %v3589_v32 = vld [vmem:[#allocation6 + $0x58] sm:$0xff] }
 0x1f7   : > { %v987_v34 = vpack.c.bf16 %v4240_v33, %v4240_v33  ;;  %1333 = vmatpush.bf16.msra.mxu2 %v3555_v49  ;;  %1506 = vmatpush.bf16.msrb.mxu0 %v3571_v15  ;;  %v1424_v15 = vpop.permute.xlu2 %1423 }
 0x1f8   : > { %1602 = vmatpush.bf16.msrb.mxu1 %v3578_v30  ;;  %vm1425_vm8 = vcmp.eq.s32.totalorder %v1424_v15, 1  ;;  %v1692_v30 = vpop.permute.xlu1 %1691  ;;  %v3637_v15 = vld [vmem:[#allocation6 + $0x58] sm:$0xff] }
 0x1f9   : > { %2900 = vst [vmem:[%s4143_s9 + $0x10] sm:$0xf] %v987_v34  ;;  %1067 = vmatmul.bf16.vlgmr.msrb.gmra.mxu3 %v987_v34  ;;  %1240 = vmatmul.bf16.vlgmr.msra.gmra.mxu1 %v987_v34  ;;  %v3587_v34 = vld [vmem:[#allocation6 + $0x48] sm:$0xff]  ;;  %vm1693_vm10 = vcmp.eq.s32.totalorder %v1692_v30, 1 }
 0x1fa   : > { %1768 = vmatpush.bf16.msrb.mxu3 %v3601_v56  ;;  %v3624_v56 = vld [vmem:[#allocation6 + $0x30] sm:$0xff] }
 0x1fb   : > { %1334 = vmatpush.bf16.msra.mxu2 %v3554_v51  ;;  %1507 = vmatpush.bf16.msrb.mxu0 %v3570_v52 }
 0x1fe   : > { %1769 = vmatpush.bf16.msrb.mxu3 %v3600_v58  ;;  %v3606_v58 = vld [vmem:[#allocation8 + $0x20] sm:$0xff] }
 0x1ff   : > { %1673 = vmatpush.bf16.msrb.mxu2 %v3593_v23  ;;  %1863 = vmatpush.bf16.msra.mxu0 %v3609_v36  ;;  %v3623_v23 = vld [vmem:[#allocation6 + $0x28] sm:$0xff]  ;;  %v3632_v36 = vld [vmem:[#allocation8 + $0x30] sm:$0xff] }
 0x202   : > { %1770 = vmatpush.bf16.msrb.mxu3 %v3599_v18 }
 0x203   : > { %1674 = vmatpush.bf16.msrb.mxu2 %v3592_v22  ;;  %1864 = vmatpush.bf16.msra.mxu0 %v3608_v55  ;;  %v3634_v55 = vld [vmem:[#allocation6 + $0x40] sm:$0xff] }
 0x206   : > { %1771 = vmatpush.bf16.msrb.mxu3 %v3598_v19 }
 0x207   : > { %1675 = vmatpush.bf16.msrb.mxu2 %v3591_v26  ;;  %1865 = vmatpush.bf16.msra.mxu0 %v3607_v57  ;;  %v3665_v57 = vld [vmem:[#allocation6 + $0x78] sm:$0xff] }
 0x20a   : > { %1772 = vmatpush.bf16.msrb.mxu3 %v3597_v21 }
 0x20b   : > { %1866 = vmatpush.bf16.msra.mxu0 %v3606_v58  ;;  %v3664_v58 = vld [vmem:[#allocation6 + $0x70] sm:$0xff] }
 0x20e   : > { %1773 = vmatpush.bf16.msrb.mxu3 %v3596_v25 }
 0x212   : > { %1774 = vmatpush.bf16.msrb.mxu3 %v3595_v28 }
 0x216   : > { %1775 = vmatpush.bf16.msrb.mxu3 %v3594_v31 }
 0x272   : > { %v1146_v60 = vpop.f32.mrf.mxu0 }
 0x276   : > { %v1241_v62 = vpop.f32.mrf.mxu1 }
 0x277   : > { %v1245_v63 = vadd.f32 %v2967_v3, %v1241_v62  ;;  %v3605_v3 = vld [vmem:[#allocation8 + $0x18] sm:$0xff]  ;;  %v3616_v62 = vld [vmem:[#allocation6 + $0x70] sm:$0xff] }
 0x278   : > { %1867 = vmatpush.bf16.msra.mxu0 %v3605_v3  ;;  %v3267_v3 = vld [vmem:[%s4136_s22 + $0x30] sm:$0xff] }
 0x279   : > { %3773 = vtanh.f32 %v1245_v63  ;;  %v3604_v63 = vld [vmem:[#allocation8 + $0x10] sm:$0xff] }
 0x27a   : > { %v1148_v1 = vpop.f32.mrf.mxu0 }
 0x27b   : > { %v3615_v1 = vld [vmem:[#allocation6 + $0x68] sm:$0xff] }
 0x27c   : > { %v1068_v2 = vpop.f32.mrf.mxu3  ;;  %1868 = vmatpush.bf16.msra.mxu0 %v3604_v63 }
 0x27d   : > { %v1069_v4 = vadd.f32 %v3757_v0, %v1068_v2  ;;  %v3620_v0 = vld [vmem:[#allocation6 + $0x10] sm:$0xff]  ;;  %v3603_v2 = vld [vmem:[#allocation8 + $0x8] sm:$0xff] }
 0x27e   : > { %v1243_v6 = vpop.f32.mrf.mxu1 }
 0x27f   : > { %v3774_v7 = vpop.eup %3773  ;;  %v1150_v8 = vadd.f32 %v1146_v60, %v1069_v4  ;;  %v3617_v60 = vld [vmem:[#allocation6 + $0x78] sm:$0xff]  ;;  %v3619_v4 = vld [vmem:[#allocation6 + $0x8] sm:$0xff]  ;;  %v3602_v6 = vld [vmem:[#allocation8] sm:$0xff] }
 0x280   : > { %v1253_v9 = vsel %vm1252_vm5, %v4240_v33, %v3774_v7  ;;  %v3588_v33 = vld [vmem:[#allocation6 + $0x50] sm:$0xff]  ;;  %1941 = vmatpush.bf16.msra.mxu1 %v3617_v60  ;;  %1869 = vmatpush.bf16.msra.mxu0 %v3603_v2  ;;  %v3618_v7 = vld [vmem:[#allocation6] sm:$0xff]  ;;  %v3655_v60 = vld [vmem:[#allocation8 + $0x28] sm:$0xff]  ;;  %v2055_v2 = vpop.permute.xlu0 %2054 }
 0x281   : > { %3775 = vtanh.f32 %v1150_v8  ;;  %v1255_v10 = vpack.c.bf16 %v1253_v9, %v1253_v9  ;;  %v3613_v8 = vld [vmem:[#allocation6 + $0x58] sm:$0xff]  ;;  %vm2056_vm11 = vcmp.eq.s32.totalorder %v2055_v2, 1 }
 0x283   : > { %3000 = vst [vmem:[%s4143_s9 + $0x18] sm:$0xf] %v1255_v10  ;;  %1335 = vmatmul.bf16.vlgmr.msra.gmra.mxu2 %v1255_v10  ;;  %1508 = vmatmul.bf16.vlgmr.msrb.gmra.mxu0 %v1255_v10  ;;  %v3611_v10 = vld [vmem:[#allocation6 + $0x48] sm:$0xff] }
 0x284   : > { %v1070_v12 = vpop.f32.mrf.mxu3  ;;  %1942 = vmatpush.bf16.msra.mxu1 %v3616_v62  ;;  %1870 = vmatpush.bf16.msra.mxu0 %v3602_v6 }
 0x285   : > { %v3610_v12 = vld [vmem:[#allocation6 + $0x40] sm:$0xff] }
 0x287   : > { %v3776_v14 = vpop.eup %3775 }
 0x288   : > { %v4252_v16 = vsel %vm1157_vm6, %v4234_v29, %v3776_v14  ;;  %v3590_v29 = vld [vmem:[#allocation6 + $0x60] sm:$0xff]  ;;  %1943 = vmatpush.bf16.msra.mxu1 %v3615_v1  ;;  %v3633_v14 = vld [vmem:[#allocation8 + $0x38] sm:$0xff] }
 0x289   : > { %v1160_v17 = vpack.c.bf16 %v4252_v16, %v4252_v16  ;;  %1676 = vmatpush.bf16.msrb.mxu2 %v3590_v29  ;;  %v3760_v1 = vld [vmem:[%s4357_s5] ss:$0 sm:$0xff] }
 0x28b   : > { %2965 = vst [vmem:[%s4143_s9 + $0x14] sm:$0xf] %v1160_v17  ;;  %1413 = vmatmul.bf16.vlgmr.msra.gmra.mxu3 %v1160_v17 }
 0x28c   : > { %1944 = vmatpush.bf16.msra.mxu1 %v3614_v5  ;;  %2131 = vmatpush.bf16.msra.mxu3 %v3633_v14 }
 0x28d   : > { %1677 = vmatpush.bf16.msrb.mxu2 %v3589_v32 }
 0x290   : > { %1945 = vmatpush.bf16.msra.mxu1 %v3613_v8  ;;  %2132 = vmatpush.bf16.msra.mxu3 %v3632_v36 }
 0x291   : > { %1678 = vmatpush.bf16.msrb.mxu2 %v3588_v33 }
 0x295   : > { %1679 = vmatpush.bf16.msrb.mxu2 %v3587_v34 }
 0x299   : > { %1680 = vmatpush.bf16.msrb.mxu2 %v3586_v35  ;;  %v3649_v35 = vld [vmem:[#allocation6 + $0x38] sm:$0xff] }
 0x29d   : > { %2036 = vmatpush.bf16.msra.mxu2 %v3625_v54  ;;  %v3635_v54 = vld [vmem:[#allocation6 + $0x48] sm:$0xff] }
 0x2a1   : > { %2037 = vmatpush.bf16.msra.mxu2 %v3624_v56  ;;  %v3657_v56 = vld [vmem:[#allocation8 + $0x38] sm:$0xff] }
 0x2a5   : > { %2038 = vmatpush.bf16.msra.mxu2 %v3623_v23  ;;  %v3656_v23 = vld [vmem:[#allocation8 + $0x30] sm:$0xff] }
 0x2a9   : > { %2039 = vmatpush.bf16.msra.mxu2 %v3622_v59 }
 0x2ad   : > { %2040 = vmatpush.bf16.msra.mxu2 %v3621_v61  ;;  %v3654_v61 = vld [vmem:[#allocation8 + $0x20] sm:$0xff] }
 0x2b1   : > { %2041 = vmatpush.bf16.msra.mxu2 %v3620_v0 }
 0x2b5   : > { %2042 = vmatpush.bf16.msra.mxu2 %v3619_v4 }
 0x2b9   : > { %2043 = vmatpush.bf16.msra.mxu2 %v3618_v7 }
 0x300   : > { %v1509_v38 = vpop.f32.mrf.mxu0 }
 0x301   : > { %v1513_v39 = vadd.f32 %v3067_v37, %v1509_v38  ;;  %v3648_v37 = vld [vmem:[#allocation6 + $0x30] sm:$0xff]  ;;  %v3631_v38 = vld [vmem:[#allocation8 + $0x28] sm:$0xff] }
 0x302   : > { %2133 = vmatpush.bf16.msra.mxu3 %v3631_v38 }
 0x303   : > { %3777 = vtanh.f32 %v1513_v39  ;;  %v3641_v39 = vld [vmem:[#allocation6 + $0x78] sm:$0xff] }
 0x304   : > { %2209 = vmatpush.bf16.msrb.mxu0 %v3641_v39 }
 0x306   : > { %v1336_v40 = vpop.f32.mrf.mxu2  ;;  %2134 = vmatpush.bf16.msra.mxu3 %v3630_v41 }
 0x307   : > { %v1337_v46 = vadd.f32 %v3758_v44, %v1336_v40  ;;  %v3647_v40 = vld [vmem:[#allocation6 + $0x28] sm:$0xff]  ;;  %v3629_v44 = vld [vmem:[#allocation8 + $0x18] sm:$0xff] }
 0x308   : > { %v1511_v42 = vpop.f32.mrf.mxu0 }
 0x309   : > { %v3778_v43 = vpop.eup %3777  ;;  %v3640_v42 = vld [vmem:[#allocation6 + $0x70] sm:$0xff] }
 0x30a   : > { %v4261_v11 = vsel %vm1520_vm7, %v1253_v9, %v3778_v43  ;;  %v3612_v9 = vld [vmem:[#allocation6 + $0x50] sm:$0xff]  ;;  %v3646_v43 = vld [vmem:[#allocation6 + $0x20] sm:$0xff]  ;;  %2210 = vmatpush.bf16.msrb.mxu0 %v3640_v42  ;;  %2135 = vmatpush.bf16.msra.mxu3 %v3629_v44  ;;  %v2228_v42 = vpop.permute.xlu1 %2227 }
 0x30b   : > { %v1523_v45 = vpack.c.bf16 %v4261_v11, %v4261_v11  ;;  %1946 = vmatpush.bf16.msra.mxu1 %v3612_v9  ;;  %vm2229_vm14 = vcmp.eq.s32.totalorder %v2228_v42, 1 }
 0x30d   : > { %3100 = vst [vmem:[%s4143_s9 + $0x20] sm:$0xf] %v1523_v45  ;;  %1603 = vmatmul.bf16.vlgmr.msrb.gmra.mxu1 %v1523_v45  ;;  %1776 = vmatmul.bf16.vlgmr.msrb.gmra.mxu3 %v1523_v45  ;;  %v3645_v45 = vld [vmem:[#allocation6 + $0x18] sm:$0xff] }
 0x30e   : > { %v1338_v48 = vpop.f32.mrf.mxu2  ;;  %v1414_v49 = vpop.f32.mrf.mxu3 }
 0x30f   : > { %v1418_v50 = vadd.f32 %v1414_v49, %v1337_v46  ;;  %1947 = vmatpush.bf16.msra.mxu1 %v3611_v10  ;;  %v3628_v46 = vld [vmem:[#allocation8 + $0x10] sm:$0xff]  ;;  %v3638_v48 = vld [vmem:[#allocation6 + $0x60] sm:$0xff] }
 0x310   : > { %v3644_v49 = vld [vmem:[#allocation6 + $0x10] sm:$0xff]  ;;  %2136 = vmatpush.bf16.msra.mxu3 %v3628_v46 }
 0x311   : > { %3779 = vtanh.f32 %v1418_v50  ;;  %v3627_v50 = vld [vmem:[#allocation8 + $0x8] sm:$0xff] }
 0x313   : > { %1948 = vmatpush.bf16.msra.mxu1 %v3610_v12  ;;  %v1960_v12 = vpop.permute.xlu2 %1959 }
 0x314   : > { %2137 = vmatpush.bf16.msra.mxu3 %v3627_v50  ;;  %vm1961_vm12 = vcmp.eq.s32.totalorder %v1960_v12, 1 }
 0x316   : > { %v1416_v51 = vpop.f32.mrf.mxu3 }
 0x317   : > { %v3780_v47 = vpop.eup %3779  ;;  %2304 = vmatpush.bf16.msrb.mxu1 %v3649_v35  ;;  %v3643_v51 = vld [vmem:[#allocation6 + $0x8] sm:$0xff] }
 0x318   : > { %v4267_v52 = vsel %vm1425_vm8, %v4252_v16, %v3780_v47  ;;  %v3167_v16 = vld [vmem:[%s4136_s22 + $0x28] sm:$0xff]  ;;  %v3626_v47 = vld [vmem:[#allocation8] sm:$0xff] }
 0x319   : > { %v1428_v53 = vpack.c.bf16 %v4267_v52, %v4267_v52  ;;  %2138 = vmatpush.bf16.msra.mxu3 %v3626_v47 }
 0x31b   : > { %3065 = vst [vmem:[%s4143_s9 + $0x1c] sm:$0xf] %v1428_v53  ;;  %1681 = vmatmul.bf16.vlgmr.msrb.gmra.mxu2 %v1428_v53  ;;  %2305 = vmatpush.bf16.msrb.mxu1 %v3648_v37  ;;  %v3642_v53 = vld [vmem:[#allocation6] sm:$0xff] }
 0x31c   : > { %2399 = vmatpush.bf16.msrb.mxu2 %v3657_v56 }
 0x31d   : > { %2477 = vmatpush.bf16.msrb.mxu3 %v3665_v57 }
 0x31f   : > { %2306 = vmatpush.bf16.msrb.mxu1 %v3647_v40 }
 0x320   : > { %2400 = vmatpush.bf16.msrb.mxu2 %v3656_v23 }
 0x321   : > { %2478 = vmatpush.bf16.msrb.mxu3 %v3664_v58 }
 0x323   : > { %2307 = vmatpush.bf16.msrb.mxu1 %v3646_v43 }
 0x324   : > { %2401 = vmatpush.bf16.msrb.mxu2 %v3655_v60 }
 0x327   : > { %2308 = vmatpush.bf16.msrb.mxu1 %v3645_v45 }
 0x328   : > { %2402 = vmatpush.bf16.msrb.mxu2 %v3654_v61 }
 0x32b   : > { %2309 = vmatpush.bf16.msrb.mxu1 %v3644_v49  ;;  %v3762_v49 = vld [vmem:[%s4357_s5] ss:$0 sm:$0xff] }
 0x32f   : > { %2310 = vmatpush.bf16.msrb.mxu1 %v3643_v51 }
 0x333   : > { %2311 = vmatpush.bf16.msrb.mxu1 %v3642_v53 }
 0x38a   : > { %v1604_v13 = vpop.f32.mrf.mxu1 }
 0x38b   : > { %v1605_v27 = vadd.f32 %v3759_v24, %v1604_v13  ;;  %v3661_v24 = vld [vmem:[#allocation6 + $0x58] sm:$0xff] }
 0x390   : > { %v1777_v17 = vpop.f32.mrf.mxu3 }
 0x391   : > { %v1781_v18 = vadd.f32 %v3167_v16, %v1777_v17 }
 0x392   : > { %v1606_v19 = vpop.f32.mrf.mxu1 }
 0x393   : > { %3781 = vtanh.f32 %v1781_v18  ;;  %v3653_v18 = vld [vmem:[#allocation8 + $0x18] sm:$0xff]  ;;  %v3663_v19 = vld [vmem:[#allocation6 + $0x68] sm:$0xff] }
 0x394   : > { %2403 = vmatpush.bf16.msrb.mxu2 %v3653_v18  ;;  %2479 = vmatpush.bf16.msrb.mxu3 %v3663_v19 }
 0x398   : > { %v1779_v21 = vpop.f32.mrf.mxu3  ;;  %2404 = vmatpush.bf16.msrb.mxu2 %v3652_v20 }
 0x399   : > { %v3782_v22 = vpop.eup %3781  ;;  %v3662_v21 = vld [vmem:[#allocation6 + $0x60] sm:$0xff] }
 0x39a   : > { %v4277_v25 = vsel %vm1788_vm9, %v4261_v11, %v3782_v22  ;;  %v3639_v11 = vld [vmem:[#allocation6 + $0x68] sm:$0xff]  ;;  %2480 = vmatpush.bf16.msrb.mxu3 %v3662_v21 }
 0x39b   : > { %v1791_v26 = vpack.c.bf16 %v4277_v25, %v4277_v25  ;;  %2211 = vmatpush.bf16.msrb.mxu0 %v3639_v11  ;;  %v3651_v22 = vld [vmem:[#allocation8 + $0x8] sm:$0xff] }
 0x39c   : > { %2405 = vmatpush.bf16.msrb.mxu2 %v3651_v22 }
 0x39d   : > { %3200 = vst [vmem:[%s4143_s9 + $0x28] sm:$0xf] %v1791_v26  ;;  %1871 = vmatmul.bf16.vlgmr.msra.gmra.mxu0 %v1791_v26  ;;  %2044 = vmatmul.bf16.vlgmr.msra.gmra.mxu2 %v1791_v26  ;;  %v3660_v26 = vld [vmem:[#allocation6 + $0x50] sm:$0xff] }
 0x39e   : > { %v1682_v28 = vpop.f32.mrf.mxu2  ;;  %2481 = vmatpush.bf16.msrb.mxu3 %v3661_v24 }
 0x39f   : > { %v1686_v29 = vadd.f32 %v1682_v28, %v1605_v27  ;;  %2212 = vmatpush.bf16.msrb.mxu0 %v3638_v48  ;;  %v3659_v27 = vld [vmem:[#allocation6 + $0x48] sm:$0xff]  ;;  %v3658_v28 = vld [vmem:[#allocation6 + $0x40] sm:$0xff] }
 0x3a1   : > { %3783 = vtanh.f32 %v1686_v29  ;;  %v3367_v29 = vld [vmem:[%s4136_s22 + $0x38] sm:$0xff]  ;;  %s3899_s22 = sshra.s32 %s2523_s16, 4  ;;  %s3900_s22 = int_to_ptr.hbm [resolvable:$true] %s3899_s22 }
 0x3a2   : > { %2482 = vmatpush.bf16.msrb.mxu3 %v3660_v26  ;;  %s3901_s15 = scalar_lea.hbm %s3900_s22, 64  ;;  %p3906_p7 = scmp.lt.s32.totalorder %s3900_s22, %s4358_s6 }
 0x3a3   : > { %2213 = vmatpush.bf16.msrb.mxu0 %v3637_v15  ;;  %p3902_p1 = scmp.ne.s32.totalorder %s3900_s22, %s3901_s15  ;;  %p3907_p8 = scmp.lt.s32.totalorder %s3905_s21, %s3901_s15 }
 0x3a5   : > { %p3903_p3 = pnand %p3902_p1, %p4080_p5  ;;  %p3908_p9 = por %p3907_p8, %p3906_p7 }
 0x3a6   : > { %v1684_v31 = vpop.f32.mrf.mxu2  ;;  %2483 = vmatpush.bf16.msrb.mxu3 %v3659_v27 }
 0x3a7   : > { %v3784_v32 = vpop.eup %3783  ;;  %p3904_p4 = pneg %p3903_p3 }
 0x3a8   : > { %v4283_v33 = vsel %vm1693_vm10, %v4267_v52, %v3784_v32  ;;  %v3636_v52 = vld [vmem:[#allocation6 + $0x50] sm:$0xff]  ;;  %v3761_v32 = vld [vmem:[%s4357_s5] ss:$0 sm:$0xff] }
 0x3a9   : > { %v1696_v34 = vpack.c.bf16 %v4283_v33, %v4283_v33  ;;  %2214 = vmatpush.bf16.msrb.mxu0 %v3636_v52  ;;  %v2496_v52 = vpop.permute.xlu0 %2495  ;;  %p3909_p10 = pnand %p3908_p9, %p3904_p4 }
 0x3aa   : > { %2484 = vmatpush.bf16.msrb.mxu3 %v3658_v28  ;;  %vm2497_vm15 = vcmp.eq.s32.totalorder %v2496_v52, 1 }
 0x3ab   : > { %3165 = vst [vmem:[%s4143_s9 + $0x24] sm:$0xf] %v1696_v34  ;;  %1949 = vmatmul.bf16.vlgmr.msra.gmra.mxu1 %v1696_v34 }
 0x3ad   : > { %2215 = vmatpush.bf16.msrb.mxu0 %v3635_v54 }
 0x3b1   : > { %2216 = vmatpush.bf16.msrb.mxu0 %v3634_v55 }
 0x41a   : > { %v1872_v59 = vpop.f32.mrf.mxu0 }
 0x41b   : > { %v1873_v4 = vadd.f32 %v3760_v1, %v1872_v59 }
 0x420   : > { %v2045_v62 = vpop.f32.mrf.mxu2 }
 0x421   : > { %v2049_v63 = vadd.f32 %v3267_v3, %v2045_v62 }
 0x422   : > { %v1874_v0 = vpop.f32.mrf.mxu0 }
 0x423   : > { %3785 = vtanh.f32 %v2049_v63 }
 0x428   : > { %v1950_v5 = vpop.f32.mrf.mxu1  ;;  %v2047_v6 = vpop.f32.mrf.mxu2 }
 0x429   : > { %v3786_v7 = vpop.eup %3785  ;;  %v1954_v8 = vadd.f32 %v1950_v5, %v1873_v4 }
 0x42a   : > { %v2057_v9 = vsel %vm2056_vm11, %v4277_v25, %v3786_v7  ;;  %v3650_v25 = vld [vmem:[#allocation8] sm:$0xff] }
 0x42b   : > { %3787 = vtanh.f32 %v1954_v8  ;;  %v2059_v10 = vpack.c.bf16 %v2057_v9, %v2057_v9  ;;  %2406 = vmatpush.bf16.msrb.mxu2 %v3650_v25 }
 0x42d   : > { %3300 = vst [vmem:[%s4143_s9 + $0x30] sm:$0xf] %v2059_v10  ;;  %2139 = vmatmul.bf16.vlgmr.msra.gmra.mxu3 %v2059_v10  ;;  %2312 = vmatmul.bf16.vlgmr.msrb.gmra.mxu1 %v2059_v10 }
 0x430   : > { %v1952_v13 = vpop.f32.mrf.mxu1 }
 0x431   : > { %v3788_v14 = vpop.eup %3787 }
 0x432   : > { %v1962_v16 = vsel %vm1961_vm12, %v4283_v33, %v3788_v14  ;;  %v2323_v33 = vpop.permute.xlu2 %2322 }
 0x433   : > { %v1964_v17 = vpack.c.bf16 %v1962_v16, %v1962_v16  ;;  %vm2324_vm13 = vcmp.eq.s32.totalorder %v2323_v33, 1 }
 0x435   : > { %3265 = vst [vmem:[%s4143_s9 + $0x2c] sm:$0xf] %v1964_v17  ;;  %2217 = vmatmul.bf16.vlgmr.msrb.gmra.mxu0 %v1964_v17 }
 0x4aa   : > { %v2313_v30 = vpop.f32.mrf.mxu1 }
 0x4ab   : > { %v2317_v31 = vadd.f32 %v3367_v29, %v2313_v30 }
 0x4ad   : > { %3789 = vtanh.f32 %v2317_v31 }
 0x4b0   : > { %v2140_v34 = vpop.f32.mrf.mxu3 }
 0x4b1   : > { %v2141_v35 = vadd.f32 %v3761_v32, %v2140_v34 }
 0x4b2   : > { %v2218_v36 = vpop.f32.mrf.mxu0  ;;  %v2315_v37 = vpop.f32.mrf.mxu1 }
 0x4b3   : > { %v3790_v38 = vpop.eup %3789  ;;  %v2222_v39 = vadd.f32 %v2218_v36, %v2141_v35 }
 0x4b4   : > { %v2325_v40 = vsel %vm2324_vm13, %v2057_v9, %v3790_v38 }
 0x4b5   : > { %3791 = vtanh.f32 %v2222_v39  ;;  %2326 = vst [vmem:[#allocation2] sm:$0xff] %v2325_v40  ;;  %v2327_v41 = vpack.c.bf16 %v2325_v40, %v2325_v40 }
 0x4b6   : > { %2504 = vst [vmem:[#allocation10] sm:$0xff] %v2325_v40 }
 0x4b7   : > { %3400 = vst [vmem:[%s4143_s9 + $0x38] sm:$0xf] %v2327_v41  ;;  %2407 = vmatmul.bf16.vlgmr.msrb.gmra.mxu2 %v2327_v41 }
 0x4b8   : > { %v2142_v43 = vpop.f32.mrf.mxu3 }
 0x4ba   : > { %v2220_v44 = vpop.f32.mrf.mxu0 }
 0x4bb   : > { %v3792_v11 = vpop.eup %3791 }
 0x4bc   : > { %v2230_v45 = vsel %vm2229_vm14, %v1962_v16, %v3792_v11 }
 0x4bd   : > { %v2232_v46 = vpack.c.bf16 %v2230_v45, %v2230_v45 }
 0x4bf   : > { %3365 = vst [vmem:[%s4143_s9 + $0x34] sm:$0xf] %v2232_v46  ;;  %2485 = vmatmul.bf16.vlgmr.msrb.gmra.mxu3 %v2232_v46 }
 0x53a   : > { %v2408_v48 = vpop.f32.mrf.mxu2 }
 0x53b   : > { %v2409_v50 = vadd.f32 %v3762_v49, %v2408_v48 }
 0x542   : > { %v2410_v15 = vpop.f32.mrf.mxu2  ;;  %v2486_v51 = vpop.f32.mrf.mxu3 }
 0x543   : > { %v2490_v47 = vadd.f32 %v2486_v51, %v2409_v50 }
 0x545   : > { %3793 = vtanh.f32 %v2490_v47 }
 0x54a   : > { %v2488_v53 = vpop.f32.mrf.mxu3 }
 0x54b   : > { %v3794_v54 = vpop.eup %3793 }
 0x54c   : > { %v2498_v55 = vsel %vm2497_vm15, %v2230_v45, %v3794_v54 }
 0x54d   : > { %2499 = vst [vmem:[#allocation2 + $0x8] sm:$0xff] %v2498_v55  ;;  %v2500_v56 = vpack.c.bf16 %v2498_v55, %v2498_v55 }
 0x54e   : > { %2505 = vst [vmem:[#allocation10 + $0x8] sm:$0xff] %v2498_v55 }
 0x54f   : > { %3465 = vst [vmem:[%s4143_s9 + $0x3c] sm:$0xf] %v2500_v56 }
 0x550   : > { %3912 = shalt.err (!%p3909_p10)
}
 0x551   : > { %s3998_s3 = smov 128   ;;  %s3999_s9 = smov 8  }
 0x552   : > { %3680 = dma.vmem_to_hbm [thread:$0]  (%p4080_p5), %s2521_s13, 1024, %s2523_s16, %s2507_s14, %s3998_s3, %s3998_s3, %s3999_s9  }
 0x553   : > { %3682 = dma.vmem_to_hbm [thread:$0]  (%p178_p2), %s2535_s19, 256, %s2537_s8, [#allocation11], %s3998_s3, %s3998_s3, %s3999_s9  }
 0x554   : > { %3966 = dma.done.wait (%p178_p2), [#allocation11], 256  }
 0x555   : > { %3968 = vsyncadd (%p178_p2), [#allocation11], 4294967040 }
 0x556 PF: > { %p3708_p11 = scmp.ge.s32.totalorder %s3987_s27, 2  ;;  %s2556_s23 = sand.u32 1, %s3975_s24  }
 0x557   : > { %s2557_s29 = scalar_lea.sflag [#allocation5], %s2556_s23 }
 0x558   : > { %p3697_p12 = pnand %p3708_p11, %p4084_p6 }
 0x55a   : > { %p3698_p13 = pneg %p3697_p12 }
 0x55c   : > { %3970 = dma.done.wait (%p3698_p13), %s2557_s29, 1024  }
 0x55d   : > { %3972 = vsyncadd (%p3698_p13), %s2557_s29, 4294966272  ;;  %p21_p5 = scmp.ge.s32.totalorder %s4065_s30, 4   ;;  %s4368_s24 = smov %s3979_s25 }
 0x55e   : > { %s4369_s25 = smov %s3983_s26  ;;  %s4370_s26 = smov %s4076_s10 }
 0x55f   : > { %s4371_s27 = smov %s4065_s30  ;;  %23 = sbr.rel (!%p21_p5) target bundleno = 9 (0x9), region = 130 }
 0x564   :  { %2563 = vsyncpa [#allocation4], 1 }
 0x565   :  { %2565 = vsyncpa [#allocation4 + $0x1], 1 }
 0x566   :  { %2566 = vsyncpa [#allocation7], 1 }
 0x567   :  { %2567 = vsyncpa [#allocation5], 1 }
 0x568   :  { %2569 = vsyncpa [#allocation5 + $0x1], 1 }
 0x569   :  { %2570 = vsyncpa [#allocation11], 1 }

</bundles_post_ra>
